<compile_context>
chip_gen: v7x
topology: tpu7x:2x2x1
jax: 0.10.0
libtpu: 0.0.40
codegen_flags: <defaults>
</compile_context>

<pallas_src>
import jax
import jax.numpy as jnp
import numpy as np
from jax.experimental import pallas as pl
from jax.experimental.pallas import tpu as pltpu

IN_DIM = 28 * 28          # 784
IN_PAD = 896              # 7 * 128, lane-aligned K for fc1
HID = 512
OUT_DIM = 10
OUT_PAD = 128             # lane-dense output block
TB_MAX = 256              # batch tile: fills 2x256 MXU (v6e/v7x), 2x128 tiles on v5e
NEG_BIG = -1e30           # finite "-inf" for the masked log_softmax


def _round_up(n, m):
    return ((n + m - 1) // m) * m


def mlp_kernel(x_ref, w1_ref, b1_ref, w2_ref, b2_ref, w3_ref, b3_ref, o_ref):
    cdt = w1_ref.dtype                       # dtype fed to the MXU (bf16 or f32)

    x = x_ref[...]                           # (TB, IN_PAD)

    # fc1 + tanh (f32 accumulate, f32 bias/tanh -- safe on v5e too)
    h1 = jnp.dot(x, w1_ref[...], preferred_element_type=jnp.float32) + b1_ref[...]
    h1 = jnp.tanh(h1)                        # (TB, HID) f32

    # fc2 + tanh
    h2 = jnp.dot(h1.astype(cdt), w2_ref[...],
                 preferred_element_type=jnp.float32) + b2_ref[...]
    h2 = jnp.tanh(h2)                        # (TB, HID) f32

    # fc3 (output features zero-padded to OUT_PAD lanes)
    logits = jnp.dot(h2.astype(cdt), w3_ref[...],
                     preferred_element_type=jnp.float32) + b3_ref[...]   # (TB, OUT_PAD)

    # log_softmax over the first OUT_DIM lanes only (padded lanes masked out)
    col = jax.lax.broadcasted_iota(jnp.int32, logits.shape, 1)
    valid = col < OUT_DIM
    masked = jnp.where(valid, logits, NEG_BIG)
    m = jnp.max(masked, axis=-1, keepdims=True)
    s = masked - m
    e = jnp.where(valid, jnp.exp(s), 0.0)
    lse = jnp.log(jnp.sum(e, axis=-1, keepdims=True))
    o_ref[...] = s - lse                     # padded lanes hold garbage; sliced off


def mlp_forward(x_nchw, w1, b1, w2, b2, w3, b3, *, compute_dtype=jnp.bfloat16):
    B = x_nchw.shape[0]
    x = x_nchw.reshape(B, IN_DIM).astype(jnp.float32)   # same as torch x.view(-1, 784)

    # Batch tiling: one grid step for small batches, TB_MAX-row tiles otherwise.
    TB = TB_MAX if B >= TB_MAX else _round_up(B, 8)
    Bp = _round_up(B, TB)

    # Pad batch rows -> Bp, K -> IN_PAD, output features -> OUT_PAD.
    # MXU operands cast to compute_dtype; biases stay f32.
    xp = jnp.zeros((Bp, IN_PAD), jnp.float32).at[:B, :IN_DIM].set(x).astype(compute_dtype)
    w1p = jnp.zeros((IN_PAD, HID), jnp.float32).at[:IN_DIM, :].set(w1).astype(compute_dtype)
    w2p = w2.astype(compute_dtype)
    w3p = jnp.zeros((HID, OUT_PAD), jnp.float32).at[:, :OUT_DIM].set(w3).astype(compute_dtype)
    b1p = b1.astype(jnp.float32)
    b2p = b2.astype(jnp.float32)
    b3p = jnp.zeros((1, OUT_PAD), jnp.float32).at[:, :OUT_DIM].set(b3)

    grid = (Bp // TB,)
    out = pl.pallas_call(
        mlp_kernel,
        out_shape=jax.ShapeDtypeStruct((Bp, OUT_PAD), jnp.float32),
        grid_spec=pltpu.PrefetchScalarGridSpec(
            num_scalar_prefetch=0,
            grid=grid,
            in_specs=[
                pl.BlockSpec((TB, IN_PAD), lambda i: (i, 0)),      # x tile over batch
                pl.BlockSpec((IN_PAD, HID), lambda i: (0, 0)),     # w1 (resident)
                pl.BlockSpec((1, HID), lambda i: (0, 0)),          # b1
                pl.BlockSpec((HID, HID), lambda i: (0, 0)),        # w2
                pl.BlockSpec((1, HID), lambda i: (0, 0)),          # b2
                pl.BlockSpec((HID, OUT_PAD), lambda i: (0, 0)),    # w3 (lane-padded)
                pl.BlockSpec((1, OUT_PAD), lambda i: (0, 0)),      # b3 (lane-padded)
            ],
            out_specs=pl.BlockSpec((TB, OUT_PAD), lambda i: (i, 0)),
        ),
        compiler_params=pltpu.CompilerParams(
            dimension_semantics=("parallel",),   # shards batch grid across TCs (v7x)
        ),
    )(xp, w1p, b1p, w2p, b2p, w3p, b3p)

    return out[:B, :OUT_DIM]


def init_params(key):
    # Deterministic init mimicking torch.nn.Linear's U(-1/sqrt(fan_in), 1/sqrt(fan_in)).
    ks = jax.random.split(key, 6)

    def lin(kw, kb, fan_in, fan_out):
        bound = 1.0 / np.sqrt(fan_in)
        w = jax.random.uniform(kw, (fan_in, fan_out), jnp.float32, -bound, bound)
        b = jax.random.uniform(kb, (1, fan_out), jnp.float32, -bound, bound)
        return w, b

    w1, b1 = lin(ks[0], ks[1], IN_DIM, HID)
    w2, b2 = lin(ks[2], ks[3], HID, HID)
    w3, b3 = lin(ks[4], ks[5], HID, OUT_DIM)
    return w1, b1, w2, b2, w3, b3


def reference_forward(x_nchw, w1, b1, w2, b2, w3, b3):
    x = x_nchw.reshape(x_nchw.shape[0], IN_DIM).astype(jnp.float32)
    h1 = jnp.tanh(x @ w1 + b1)
    h2 = jnp.tanh(h1 @ w2 + b2)
    logits = h2 @ w3 + b3
    return jax.nn.log_softmax(logits, axis=1)


if __name__ == "__main__":
    key = jax.random.PRNGKey(0)
    k_x, k_x2, k_p = jax.random.split(key, 3)

    params = init_params(k_p)

    # Small batch (single grid step). f32 MXU path -> tight tolerance.
    B = 16
    x = jax.random.normal(k_x, (B, 1, 28, 28), dtype=jnp.float32)
    ref = reference_forward(x, *params)

    out_f32 = jax.block_until_ready(mlp_forward(x, *params, compute_dtype=jnp.float32))
    assert out_f32.shape == (B, OUT_DIM)
    assert np.allclose(np.asarray(out_f32), np.asarray(ref), atol=2e-5, rtol=2e-5)

    # Default bf16 MXU path (v6e/v7x fast path) -> relaxed tolerance.
    out_bf16 = jax.block_until_ready(mlp_forward(x, *params))
    assert np.allclose(np.asarray(out_bf16), np.asarray(ref), atol=5e-2, rtol=5e-2)

    # Larger batch exercising the tiled path (TB=256, grid=(2,)).
    B2 = 512
    x2 = jax.random.normal(k_x2, (B2, 1, 28, 28), dtype=jnp.float32)
    out2 = jax.block_until_ready(mlp_forward(x2, *params))
    ref2 = reference_forward(x2, *params)
    assert out2.shape == (B2, OUT_DIM)
    assert np.allclose(np.asarray(out2), np.asarray(ref2), atol=5e-2, rtol=5e-2)

    print("KERNEL_OK")
</pallas_src>

<mosaic_0001>
module attributes {stable_mosaic.version = 11 : i64} {
  func.func @mlp_kernel(%arg0: i32, %arg1: memref<16x896xf32, #tpu.memory_space<vmem>>, %arg2: memref<896x512xf32, #tpu.memory_space<vmem>>, %arg3: memref<1x512xf32, #tpu.memory_space<vmem>>, %arg4: memref<512x512xf32, #tpu.memory_space<vmem>>, %arg5: memref<1x512xf32, #tpu.memory_space<vmem>>, %arg6: memref<512x128xf32, #tpu.memory_space<vmem>>, %arg7: memref<1x128xf32, #tpu.memory_space<vmem>>, %arg8: memref<16x128xf32, #tpu.memory_space<vmem>>) attributes {dimension_semantics = [#tpu.dimension_semantics<parallel>], iteration_bounds = array<i64: 1>, scalar_prefetch = 0 : i64, scratch_operands = 0 : i64, tpu.core_type = #tpu.core_type<tc>, window_params = [{transform_indices = @transform_0, window_bounds = array<i64: 16, 896>}, {pipeline_mode = #tpu.pipeline_mode<synchronous>, transform_indices = @transform_1, window_bounds = array<i64: 896, 512>}, {pipeline_mode = #tpu.pipeline_mode<synchronous>, transform_indices = @transform_2, window_bounds = array<i64: 1, 512>}, {pipeline_mode = #tpu.pipeline_mode<synchronous>, transform_indices = @transform_3, window_bounds = array<i64: 512, 512>}, {pipeline_mode = #tpu.pipeline_mode<synchronous>, transform_indices = @transform_4, window_bounds = array<i64: 1, 512>}, {pipeline_mode = #tpu.pipeline_mode<synchronous>, transform_indices = @transform_5, window_bounds = array<i64: 512, 128>}, {pipeline_mode = #tpu.pipeline_mode<synchronous>, transform_indices = @transform_6, window_bounds = array<i64: 1, 128>}, {transform_indices = @transform_7, window_bounds = array<i64: 16, 128>}]} {
    %c0 = arith.constant 0 : index
    %c0_0 = arith.constant 0 : index
    %0 = vector.load %arg1[%c0, %c0_0] : memref<16x896xf32, #tpu.memory_space<vmem>>, vector<16x896xf32>
    %c0_1 = arith.constant 0 : index
    %c0_2 = arith.constant 0 : index
    %1 = vector.load %arg2[%c0_1, %c0_2] : memref<896x512xf32, #tpu.memory_space<vmem>>, vector<896x512xf32>
    %cst = arith.constant dense<0.000000e+00> : vector<16x512xf32>
    %2 = tpu.matmul %0, %1, %cst {dimension_numbers = #tpu.dot_dimension_numbers<[1], [0], [0], [1], [0, 0, 1, 1], [], []>} : vector<16x896xf32>, vector<896x512xf32>, vector<16x512xf32> -> vector<16x512xf32>
    %c0_3 = arith.constant 0 : index
    %c0_4 = arith.constant 0 : index
    %3 = vector.load %arg3[%c0_3, %c0_4] : memref<1x512xf32, #tpu.memory_space<vmem>>, vector<1x512xf32>
    %4 = vector.broadcast %3 : vector<1x512xf32> to vector<16x512xf32>
    %5 = arith.addf %2, %4 : vector<16x512xf32>
    %6 = math.tanh %5 : vector<16x512xf32>
    %c0_5 = arith.constant 0 : index
    %c0_6 = arith.constant 0 : index
    %7 = vector.load %arg4[%c0_5, %c0_6] : memref<512x512xf32, #tpu.memory_space<vmem>>, vector<512x512xf32>
    %cst_7 = arith.constant dense<0.000000e+00> : vector<16x512xf32>
    %8 = tpu.matmul %6, %7, %cst_7 {dimension_numbers = #tpu.dot_dimension_numbers<[1], [0], [0], [1], [0, 0, 1, 1], [], []>} : vector<16x512xf32>, vector<512x512xf32>, vector<16x512xf32> -> vector<16x512xf32>
    %c0_8 = arith.constant 0 : index
    %c0_9 = arith.constant 0 : index
    %9 = vector.load %arg5[%c0_8, %c0_9] : memref<1x512xf32, #tpu.memory_space<vmem>>, vector<1x512xf32>
    %10 = vector.broadcast %9 : vector<1x512xf32> to vector<16x512xf32>
    %11 = arith.addf %8, %10 : vector<16x512xf32>
    %12 = math.tanh %11 : vector<16x512xf32>
    %c0_10 = arith.constant 0 : index
    %c0_11 = arith.constant 0 : index
    %13 = vector.load %arg6[%c0_10, %c0_11] : memref<512x128xf32, #tpu.memory_space<vmem>>, vector<512x128xf32>
    %cst_12 = arith.constant dense<0.000000e+00> : vector<16x128xf32>
    %14 = tpu.matmul %12, %13, %cst_12 {dimension_numbers = #tpu.dot_dimension_numbers<[1], [0], [0], [1], [0, 0, 1, 1], [], []>} : vector<16x512xf32>, vector<512x128xf32>, vector<16x128xf32> -> vector<16x128xf32>
    %c0_13 = arith.constant 0 : index
    %c0_14 = arith.constant 0 : index
    %15 = vector.load %arg7[%c0_13, %c0_14] : memref<1x128xf32, #tpu.memory_space<vmem>>, vector<1x128xf32>
    %16 = vector.broadcast %15 : vector<1x128xf32> to vector<16x128xf32>
    %17 = arith.addf %14, %16 : vector<16x128xf32>
    %18 = tpu.iota {dimensions = array<i32: 1>} : vector<16x128xi32>
    %c10_i32 = arith.constant 10 : i32
    %19 = vector.broadcast %c10_i32 : i32 to vector<16x128xi32>
    %20 = arith.cmpi slt, %18, %19 : vector<16x128xi32>
    %cst_15 = arith.constant -1.000000e+30 : f32
    %21 = vector.broadcast %cst_15 : f32 to vector<16x128xf32>
    %22 = arith.select %20, %17, %21 : vector<16x128xi1>, vector<16x128xf32>
    %cst_16 = arith.constant dense<0xFF800000> : vector<16xf32>
    %23 = vector.multi_reduction <maximumf>, %22, %cst_16 [1] : vector<16x128xf32> to vector<16xf32>
    %24 = vector.shape_cast %23 : vector<16xf32> to vector<16x1xf32>
    %25 = vector.broadcast %24 : vector<16x1xf32> to vector<16x128xf32>
    %26 = arith.subf %22, %25 : vector<16x128xf32>
    %27 = math.exp %26 : vector<16x128xf32>
    %cst_17 = arith.constant 0.000000e+00 : f32
    %28 = vector.broadcast %cst_17 : f32 to vector<16x128xf32>
    %29 = arith.select %20, %27, %28 : vector<16x128xi1>, vector<16x128xf32>
    %cst_18 = arith.constant dense<0.000000e+00> : vector<16xf32>
    %30 = vector.multi_reduction <add>, %29, %cst_18 [1] : vector<16x128xf32> to vector<16xf32>
    %31 = vector.shape_cast %30 : vector<16xf32> to vector<16x1xf32>
    %32 = math.log %31 : vector<16x1xf32>
    %33 = vector.broadcast %32 : vector<16x1xf32> to vector<16x128xf32>
    %34 = arith.subf %26, %33 : vector<16x128xf32>
    %c0_19 = arith.constant 0 : index
    %c0_20 = arith.constant 0 : index
    %35 = vector.load %arg8[%c0_19, %c0_20] : memref<16x128xf32, #tpu.memory_space<vmem>>, vector<16x128xf32>
    tpu.vector_store %arg8[%c0_19, %c0_20], %34 {strides = array<i32>} : memref<16x128xf32, #tpu.memory_space<vmem>>, vector<16x128xf32>,
    return
  }
  func.func @transform_0(%arg0: i32) -> (i32, i32) {
    %c0_i32 = arith.constant 0 : i32
    %c0_i32_0 = arith.constant 0 : i32
    return %arg0, %c0_i32 : i32, i32
  }
  func.func @transform_1(%arg0: i32) -> (i32, i32) {
    %c0_i32 = arith.constant 0 : i32
    %c0_i32_0 = arith.constant 0 : i32
    %c0_i32_1 = arith.constant 0 : i32
    return %c0_i32, %c0_i32_0 : i32, i32
  }
  func.func @transform_2(%arg0: i32) -> (i32, i32) {
    %c0_i32 = arith.constant 0 : i32
    %c0_i32_0 = arith.constant 0 : i32
    %c0_i32_1 = arith.constant 0 : i32
    return %c0_i32, %c0_i32_0 : i32, i32
  }
  func.func @transform_3(%arg0: i32) -> (i32, i32) {
    %c0_i32 = arith.constant 0 : i32
    %c0_i32_0 = arith.constant 0 : i32
    %c0_i32_1 = arith.constant 0 : i32
    return %c0_i32, %c0_i32_0 : i32, i32
  }
  func.func @transform_4(%arg0: i32) -> (i32, i32) {
    %c0_i32 = arith.constant 0 : i32
    %c0_i32_0 = arith.constant 0 : i32
    %c0_i32_1 = arith.constant 0 : i32
    return %c0_i32, %c0_i32_0 : i32, i32
  }
  func.func @transform_5(%arg0: i32) -> (i32, i32) {
    %c0_i32 = arith.constant 0 : i32
    %c0_i32_0 = arith.constant 0 : i32
    %c0_i32_1 = arith.constant 0 : i32
    return %c0_i32, %c0_i32_0 : i32, i32
  }
  func.func @transform_6(%arg0: i32) -> (i32, i32) {
    %c0_i32 = arith.constant 0 : i32
    %c0_i32_0 = arith.constant 0 : i32
    %c0_i32_1 = arith.constant 0 : i32
    return %c0_i32, %c0_i32_0 : i32, i32
  }
  func.func @transform_7(%arg0: i32) -> (i32, i32) {
    %c0_i32 = arith.constant 0 : i32
    %c0_i32_0 = arith.constant 0 : i32
    return %arg0, %c0_i32 : i32, i32
  }
}

</mosaic_0001>

<bundles_post_ra>
// kernel: tpu_custom_call.1
= control target key start
LH: loop header
LB: loop body
LE: loop exit
PB: predicated region body
PF: predicated region fallthrough
CT: control target
= control target key end

     0   :  { %12 = vsyncpa [#allocation3], 0  ;;  %s3430_s0 = inlined_call_operand.hbm [shape: f32[16,896], index: 0, kind: input, shape index: {}]   ;;  %s3431_s1 = inlined_call_operand.hbm [shape: f32[896,512], index: 1, kind: input, shape index: {}]   ;;  %s3432_s2 = inlined_call_operand.hbm [shape: f32[1,512], index: 2, kind: input, shape index: {}]   ;;  %s3433_s3 = inlined_call_operand.hbm [shape: f32[512,512], index: 3, kind: input, shape index: {}]   ;;  %s3434_s4 = inlined_call_operand.hbm [shape: f32[1,512], index: 4, kind: input, shape index: {}]   ;;  %s3435_s5 = inlined_call_operand.hbm [shape: f32[512,128], index: 5, kind: input, shape index: {}]   ;;  %s3436_s6 = inlined_call_operand.hbm [shape: f32[1,128], index: 6, kind: input, shape index: {}]   ;;  %s3437_s7 = inlined_call_operand.hbm [shape: f32[16,128], index: 7, kind: output, shape index: {}]  }
   0x1   :  { %13 = vsyncpa [#allocation6], 0 }
   0x2   :  { %14 = vsyncpa [#allocation9], 0 }
   0x3   :  { %15 = vsyncpa [#allocation12], 0 }
   0x4   :  { %16 = vsyncpa [#allocation4], 0  ;;  %s3222_s24 = smov [#allocation5]   ;;  %s3036_s28 = scalar_lea.hbm %s3431_s1, 57344 }
   0x5   :  { %s34_s25 = sshll.u32 %s3222_s24, 4  ;;  %p3037_p0 = scmp.ne.s32.totalorder %s3431_s1, %s3036_s28  ;;  %s35_s25 = int_to_ptr.vmem [resolvable:$true] %s34_s25 }
   0x6   :  { %p3040_p1 = scmp.lt.u32.totalorder %s3036_s28, %s3431_s1 }
   0x8   :  { %p3042_p2 = pnand %p3040_p1, %p3037_p0 }
   0xa   :  { %3045 = shalt.err (!%p3042_p2)
}
   0xb   :  { %s3046_s10 = scalar_lea.vmem %s35_s25, 57344  ;;  %p3051_p4 = scmp.lt.s32.totalorder %s35_s25, %s35_s25 }
   0xc   :  { %p3047_p3 = scmp.ne.s32.totalorder %s35_s25, %s3046_s10  ;;  %p3052_p5 = scmp.lt.s32.totalorder %s3046_s10, %s3046_s10 }
   0xe   :  { %p3053_p6 = por %p3052_p5, %p3051_p4 }
  0x10   :  { %p3054_p7 = pnand %p3053_p6, %p3047_p3 }
  0x12   :  { %3057 = shalt.err (!%p3054_p7)
}
  0x13   :  { %s3223_s11 = smov 512   ;;  %s3224_s12 = smov 32  }
  0x14   :  { %40 = dma.hbm_to_vmem [thread:$0]  %s3431_s1, 57344, %s35_s25, [#allocation6], %s3223_s11, %s3223_s11, %s3224_s12  }
  0x15   :  { %s3225_s15 = smov [#allocation8]   ;;  %s3226_s17 = smov [#allocation11]  }
  0x16   :  { %s56_s16 = sshll.u32 %s3225_s15, 4  ;;  %s78_s18 = sshll.u32 %s3226_s17, 4  ;;  %s57_s16 = int_to_ptr.vmem [resolvable:$true] %s56_s16  ;;  %s79_s18 = int_to_ptr.vmem [resolvable:$true] %s78_s18 }
  0x17   :  { %s3058_s21 = scalar_lea.hbm %s3433_s3, 32768 }
  0x18   :  { %p3059_p8 = scmp.ne.s32.totalorder %s3433_s3, %s3058_s21  ;;  %p3062_p9 = scmp.lt.u32.totalorder %s3058_s21, %s3433_s3 }
  0x1a   :  { %p3064_p10 = pnand %p3062_p9, %p3059_p8 }
  0x1c   :  { %3067 = shalt.err (!%p3064_p10)
}
  0x1d   :  { %s3068_s1 = scalar_lea.vmem %s57_s16, 32768  ;;  %p3073_p12 = scmp.lt.s32.totalorder %s57_s16, %s57_s16 }
  0x1e   :  { %p3069_p11 = scmp.ne.s32.totalorder %s57_s16, %s3068_s1  ;;  %p3074_p13 = scmp.lt.s32.totalorder %s3068_s1, %s3068_s1 }
  0x20   :  { %p3075_p0 = por %p3074_p13, %p3073_p12 }
  0x22   :  { %p3076_p1 = pnand %p3075_p0, %p3069_p11 }
  0x24   :  { %3079 = shalt.err (!%p3076_p1)
}
  0x25   :  { %62 = dma.hbm_to_vmem [thread:$0]  %s3433_s3, 32768, %s57_s16, [#allocation9], %s3223_s11, %s3223_s11, %s3224_s12  }
  0x26   :  { %s3080_s30 = scalar_lea.hbm %s3435_s5, 8192 }
  0x27   :  { %p3081_p2 = scmp.ne.s32.totalorder %s3435_s5, %s3080_s30  ;;  %p3084_p3 = scmp.lt.u32.totalorder %s3080_s30, %s3435_s5 }
  0x29   :  { %p3086_p4 = pnand %p3084_p3, %p3081_p2 }
  0x2b   :  { %3089 = shalt.err (!%p3086_p4)
}
  0x2c   :  { %s3090_s14 = scalar_lea.vmem %s79_s18, 8192  ;;  %p3095_p6 = scmp.lt.s32.totalorder %s79_s18, %s79_s18 }
  0x2d   :  { %p3091_p5 = scmp.ne.s32.totalorder %s79_s18, %s3090_s14  ;;  %p3096_p7 = scmp.lt.s32.totalorder %s3090_s14, %s3090_s14 }
  0x2f   :  { %p3097_p8 = por %p3096_p7, %p3095_p6 }
  0x31   :  { %p3098_p9 = pnand %p3097_p8, %p3091_p5 }
  0x33   :  { %3101 = shalt.err (!%p3098_p9)
}
  0x34   :  { %s3227_s3 = smov 128   ;;  %s3228_s11 = smov 8  }
  0x35   :  { %84 = dma.hbm_to_vmem [thread:$0]  %s3435_s5, 8192, %s79_s18, [#allocation12], %s3227_s3, %s3227_s3, %s3228_s11  }
  0x36   :  { %s3229_s16 = smov [#allocation2]   ;;  %s3102_s21 = scalar_lea.hbm %s3430_s0, 1792 }
  0x37   :  { %s22_s17 = sshll.u32 %s3229_s16, 4  ;;  %p3103_p10 = scmp.ne.s32.totalorder %s3430_s0, %s3102_s21  ;;  %s23_s17 = int_to_ptr.vmem [resolvable:$true] %s22_s17 }
  0x38   :  { %p3106_p11 = scmp.lt.u32.totalorder %s3102_s21, %s3430_s0 }
  0x3a   :  { %p3108_p12 = pnand %p3106_p11, %p3103_p10 }
  0x3c   :  { %3111 = shalt.err (!%p3108_p12)
}
  0x3d   :  { %s3112_s1 = scalar_lea.vmem %s23_s17, 1792  ;;  %p3117_p0 = scmp.lt.s32.totalorder %s23_s17, %s23_s17 }
  0x3e   :  { %p3113_p13 = scmp.ne.s32.totalorder %s23_s17, %s3112_s1  ;;  %p3118_p1 = scmp.lt.s32.totalorder %s3112_s1, %s3112_s1 }
  0x40   :  { %p3119_p2 = por %p3118_p1, %p3117_p0 }
  0x42   :  { %p3120_p3 = pnand %p3119_p2, %p3113_p13 }
  0x44   :  { %3123 = shalt.err (!%p3120_p3)
}
  0x45   :  { %s3230_s5 = smov 896   ;;  %s3231_s18 = smov 56  }
  0x46   :  { %28 = dma.hbm_to_vmem [thread:$0]  %s3430_s0, 1792, %s23_s17, [#allocation3], %s3230_s5, %s3230_s5, %s3231_s18  }
  0x47   :  { %s3232_s28 = smov [#allocation7]   ;;  %s3233_s30 = smov [#allocation10]  }
  0x48   :  { %s47_s29 = sshll.u32 %s3232_s28, 4  ;;  %s69_s8 = sshll.u32 %s3233_s30, 4  ;;  %s48_s29 = int_to_ptr.vmem [resolvable:$true] %s47_s29  ;;  %s70_s8 = int_to_ptr.vmem [resolvable:$true] %s69_s8 }
  0x49   :  { %s3124_s13 = scalar_lea.hbm %s3432_s2, 64 }
  0x4a   :  { %p3125_p4 = scmp.ne.s32.totalorder %s3432_s2, %s3124_s13  ;;  %p3128_p5 = scmp.lt.u32.totalorder %s3124_s13, %s3432_s2 }
  0x4c   :  { %p3130_p6 = pnand %p3128_p5, %p3125_p4 }
  0x4e   :  { %3133 = shalt.err (!%p3130_p6)
}
  0x4f   :  { %s3134_s0 = scalar_lea.vmem %s48_s29, 64  ;;  %p3139_p8 = scmp.lt.s32.totalorder %s48_s29, %s48_s29 }
  0x50   :  { %p3135_p7 = scmp.ne.s32.totalorder %s48_s29, %s3134_s0  ;;  %p3140_p9 = scmp.lt.s32.totalorder %s3134_s0, %s3134_s0 }
  0x52   :  { %p3141_p10 = por %p3140_p9, %p3139_p8 }
  0x54   :  { %p3142_p11 = pnand %p3141_p10, %p3135_p7 }
  0x56   :  { %3145 = shalt.err (!%p3142_p11)
}
  0x57   :  { %50 = dma.hbm_to_vmem [thread:$0]  %s3432_s2, 64, %s48_s29, [#allocation6]  }
  0x58   :  { %s3146_s22 = scalar_lea.hbm %s3434_s4, 64 }
  0x59   :  { %p3147_p12 = scmp.ne.s32.totalorder %s3434_s4, %s3146_s22  ;;  %p3150_p13 = scmp.lt.u32.totalorder %s3146_s22, %s3434_s4 }
  0x5b   :  { %p3152_p0 = pnand %p3150_p13, %p3147_p12 }
  0x5d   :  { %3155 = shalt.err (!%p3152_p0)
}
  0x5e   :  { %s3156_s5 = scalar_lea.vmem %s70_s8, 64  ;;  %p3161_p2 = scmp.lt.s32.totalorder %s70_s8, %s70_s8 }
  0x5f   :  { %p3157_p1 = scmp.ne.s32.totalorder %s70_s8, %s3156_s5  ;;  %p3162_p3 = scmp.lt.s32.totalorder %s3156_s5, %s3156_s5 }
  0x61   :  { %p3163_p4 = por %p3162_p3, %p3161_p2 }
  0x63   :  { %p3164_p5 = pnand %p3163_p4, %p3157_p1 }
  0x65   :  { %3167 = shalt.err (!%p3164_p5)
}
  0x66   :  { %72 = dma.hbm_to_vmem [thread:$0]  %s3434_s4, 64, %s70_s8, [#allocation9]  }
  0x67   :  { %s3234_s25 = smov [#allocation13]   ;;  %s3168_s30 = scalar_lea.hbm %s3436_s6, 16 }
  0x68   :  { %s91_s27 = sshll.u32 %s3234_s25, 4  ;;  %p3169_p6 = scmp.ne.s32.totalorder %s3436_s6, %s3168_s30  ;;  %s92_s27 = int_to_ptr.vmem [resolvable:$true] %s91_s27 }
  0x69   :  { %p3172_p7 = scmp.lt.u32.totalorder %s3168_s30, %s3436_s6 }
  0x6b   :  { %p3174_p8 = pnand %p3172_p7, %p3169_p6 }
  0x6d   :  { %3177 = shalt.err (!%p3174_p8)
}
  0x6e   :  { %s3178_s12 = scalar_lea.vmem %s92_s27, 16  ;;  %s3182_s4 = scalar_lea.vmem %s92_s27, 32 }
  0x6f   :  { %p3179_p9 = scmp.ne.s32.totalorder %s92_s27, %s3178_s12  ;;  %p3183_p10 = scmp.lt.s32.totalorder %s92_s27, %s92_s27 }
  0x70   :  { %p3184_p11 = scmp.lt.s32.totalorder %s3182_s4, %s3178_s12 }
  0x72   :  { %p3185_p12 = por %p3184_p11, %p3183_p10 }
  0x74   :  { %p3186_p13 = pnand %p3185_p12, %p3179_p9 }
  0x76   :  { %3189 = shalt.err (!%p3186_p13)
}
  0x77   :  { %94 = dma.hbm_to_vmem [thread:$0]  %s3436_s6, 16, %s92_s27, [#allocation12]  }
  0x78   :  { %3212 = dma.done.wait [#allocation3], 1792  }
  0x79   :  { %3213 = vsyncadd [#allocation3], 4294965504 }
  0x7a   :  { %3214 = dma.done.wait [#allocation6], 57408  }
  0x7b   :  { %3215 = vsyncadd [#allocation6], 4294909888 }
  0x7c   :  { %3216 = dma.done.wait [#allocation9], 32832  }
  0x7d   :  { %3217 = vsyncadd [#allocation9], 4294934464 }
  0x7e   :  { %3218 = dma.done.wait [#allocation12], 8208  }
  0x7f   :  { %3219 = vsyncadd [#allocation12], 4294959088  ;;  %v131_v0 = vld [vmem:[#allocation5 + $0x8] sm:$0xff]  ;;  %v133_v2 = vld [vmem:[#allocation5 + $0x18] sm:$0xff]  ;;  %s3236_s6 = smov [#allocation14]  }
  0x80   :  { %v135_v1 = vld [vmem:[#allocation5 + $0x28] sm:$0xff]  ;;  %v137_v4 = vld [vmem:[#allocation5 + $0x38] sm:$0xff]  ;;  %v130_v5 = vld [vmem:[#allocation5] sm:$0xff]  ;;  %s2073_s16 = sshll.u32 %s3236_s6, 4  ;;  %s2074_s16 = int_to_ptr.vmem [resolvable:$true] %s2073_s16 }
  0x81   :  { %v2165_v3 = vpack.c.bf16 %v135_v1, %v131_v0  ;;  %v134_v6 = vld [vmem:[#allocation5 + $0x20] sm:$0xff]  ;;  %v2389_v7 = vpack.c.bf16 %v137_v4, %v133_v2  ;;  %v132_v9 = vld [vmem:[#allocation5 + $0x10] sm:$0xff]  ;;  %v139_v11 = vld [vmem:[#allocation5 + $0x48] sm:$0xff]  ;;  %s3190_s0 = scalar_lea.vmem %s2074_s16, 256  ;;  %p3195_p1 = scmp.lt.s32.totalorder %s2074_s16, %s2074_s16 }
  0x82   :  { %v2167_v8 = vpack.c.bf16 %v134_v6, %v130_v5  ;;  %v136_v10 = vld [vmem:[#allocation5 + $0x30] sm:$0xff]  ;;  %v143_v13 = vld [vmem:[#allocation5 + $0x68] sm:$0xff]  ;;  %v141_v14 = vld [vmem:[#allocation5 + $0x58] sm:$0xff]  ;;  %p3191_p0 = scmp.ne.s32.totalorder %s2074_s16, %s3190_s0  ;;  %p3196_p2 = scmp.lt.s32.totalorder %s3190_s0, %s3190_s0 }
  0x83   :  { %2166 = vmatprep.subr.bf16.mxu0 %v2165_v3  ;;  %v2391_v12 = vpack.c.bf16 %v136_v10, %v132_v9  ;;  %v145_v15 = vld [vmem:[#allocation5 + $0x78] sm:$0xff]  ;;  %2390 = vmatprep.subr.bf16.mxu1 %v2389_v7  ;;  %v2169_v16 = vpack.c.bf16 %v143_v13, %v139_v11  ;;  %v138_v18 = vld [vmem:[#allocation5 + $0x40] sm:$0xff]  ;;  %v140_v20 = vld [vmem:[#allocation5 + $0x50] sm:$0xff] }
  0x84   :  { %2168 = vmatpush1.bf16.msra.mxu0 %v2167_v8  ;;  %v2393_v17 = vpack.c.bf16 %v145_v15, %v141_v14  ;;  %v142_v19 = vld [vmem:[#allocation5 + $0x60] sm:$0xff]  ;;  %v144_v22 = vld [vmem:[#allocation5 + $0x70] sm:$0xff]  ;;  %v147_v23 = vld [vmem:[#allocation5 + $0x88] sm:$0xff]  ;;  %p3197_p3 = por %p3196_p2, %p3195_p1 }
  0x85   :  { %2392 = vmatpush1.bf16.msra.mxu1 %v2391_v12  ;;  %v2171_v21 = vpack.c.bf16 %v142_v19, %v138_v18  ;;  %v151_v24 = vld [vmem:[#allocation5 + $0xa8] sm:$0xff]  ;;  %2170 = vmatprep.subr.bf16.mxu0 %v2169_v16  ;;  %v2395_v25 = vpack.c.bf16 %v144_v22, %v140_v20  ;;  %v149_v27 = vld [vmem:[#allocation5 + $0x98] sm:$0xff]  ;;  %v146_v29 = vld [vmem:[#allocation5 + $0x80] sm:$0xff] }
  0x86   :  { %2394 = vmatprep.subr.bf16.mxu1 %v2393_v17  ;;  %v2173_v26 = vpack.c.bf16 %v151_v24, %v147_v23  ;;  %v153_v28 = vld [vmem:[#allocation5 + $0xb8] sm:$0xff]  ;;  %v150_v31 = vld [vmem:[#allocation5 + $0xa0] sm:$0xff]  ;;  %v148_v32 = vld [vmem:[#allocation5 + $0x90] sm:$0xff]  ;;  %p3198_p4 = pnand %p3197_p3, %p3191_p0 }
  0x87   :  { %v2397_v30 = vpack.c.bf16 %v153_v28, %v149_v27  ;;  %v152_v33 = vld [vmem:[#allocation5 + $0xb0] sm:$0xff]  ;;  %v2175_v34 = vpack.c.bf16 %v150_v31, %v146_v29  ;;  %v155_v35 = vld [vmem:[#allocation5 + $0xc8] sm:$0xff]  ;;  %v157_v37 = vld [vmem:[#allocation5 + $0xd8] sm:$0xff] }
  0x88   :  { %2172 = vmatpush1.bf16.msra.mxu0 %v2171_v21  ;;  %v159_v36 = vld [vmem:[#allocation5 + $0xe8] sm:$0xff]  ;;  %v2399_v38 = vpack.c.bf16 %v152_v33, %v148_v32  ;;  %v161_v40 = vld [vmem:[#allocation5 + $0xf8] sm:$0xff]  ;;  %v154_v41 = vld [vmem:[#allocation5 + $0xc0] sm:$0xff] }
  0x89   :  { %2396 = vmatpush1.bf16.msra.mxu1 %v2395_v25  ;;  %2174 = vmatprep.subr.bf16.mxu0 %v2173_v26  ;;  %v2177_v39 = vpack.c.bf16 %v159_v36, %v155_v35  ;;  %v158_v42 = vld [vmem:[#allocation5 + $0xe0] sm:$0xff]  ;;  %v2401_v43 = vpack.c.bf16 %v161_v40, %v157_v37  ;;  %v156_v44 = vld [vmem:[#allocation5 + $0xd0] sm:$0xff]  ;;  %v163_v46 = vld [vmem:[#allocation5 + $0x108] sm:$0xff] }
  0x8a   :  { %2398 = vmatprep.subr.bf16.mxu1 %v2397_v30  ;;  %v160_v45 = vld [vmem:[#allocation5 + $0xf0] sm:$0xff]  ;;  %v167_v47 = vld [vmem:[#allocation5 + $0x128] sm:$0xff]  ;;  %v165_v48 = vld [vmem:[#allocation5 + $0x118] sm:$0xff]  ;;  %v2179_v50 = vpack.c.bf16 %v158_v42, %v154_v41 }
  0x8b   :  { %v169_v49 = vld [vmem:[#allocation5 + $0x138] sm:$0xff]  ;;  %v2403_v51 = vpack.c.bf16 %v160_v45, %v156_v44  ;;  %v2181_v52 = vpack.c.bf16 %v167_v47, %v163_v46  ;;  %v162_v53 = vld [vmem:[#allocation5 + $0x100] sm:$0xff]  ;;  %v164_v55 = vld [vmem:[#allocation5 + $0x110] sm:$0xff] }
  0x8c   :  { %2176 = vmatpush1.bf16.msra.mxu0 %v2175_v34  ;;  %v166_v54 = vld [vmem:[#allocation5 + $0x120] sm:$0xff]  ;;  %v2405_v56 = vpack.c.bf16 %v169_v49, %v165_v48  ;;  %v168_v57 = vld [vmem:[#allocation5 + $0x130] sm:$0xff]  ;;  %v171_v58 = vld [vmem:[#allocation5 + $0x148] sm:$0xff] }
  0x8d   :  { %2400 = vmatpush1.bf16.msra.mxu1 %v2399_v38  ;;  %2178 = vmatprep.subr.bf16.mxu0 %v2177_v39  ;;  %v175_v59 = vld [vmem:[#allocation5 + $0x168] sm:$0xff]  ;;  %v173_v60 = vld [vmem:[#allocation5 + $0x158] sm:$0xff]  ;;  %v2183_v62 = vpack.c.bf16 %v166_v54, %v162_v53  ;;  %v2407_v63 = vpack.c.bf16 %v168_v57, %v164_v55  ;;  %v170_v1 = vld [vmem:[#allocation5 + $0x140] sm:$0xff] }
  0x8e   :  { %2402 = vmatprep.subr.bf16.mxu1 %v2401_v43  ;;  %v177_v61 = vld [vmem:[#allocation5 + $0x178] sm:$0xff]  ;;  %v2185_v0 = vpack.c.bf16 %v175_v59, %v171_v58  ;;  %v174_v2 = vld [vmem:[#allocation5 + $0x160] sm:$0xff]  ;;  %v172_v3 = vld [vmem:[#allocation5 + $0x150] sm:$0xff] }
  0x8f   :  { %v2409_v4 = vpack.c.bf16 %v177_v61, %v173_v60  ;;  %v176_v5 = vld [vmem:[#allocation5 + $0x170] sm:$0xff]  ;;  %v179_v6 = vld [vmem:[#allocation5 + $0x188] sm:$0xff]  ;;  %v181_v8 = vld [vmem:[#allocation5 + $0x198] sm:$0xff]  ;;  %v2187_v10 = vpack.c.bf16 %v174_v2, %v170_v1 }
  0x90   :  { %2180 = vmatpush1.bf16.msra.mxu0 %v2179_v50  ;;  %v183_v7 = vld [vmem:[#allocation5 + $0x1a8] sm:$0xff]  ;;  %v185_v9 = vld [vmem:[#allocation5 + $0x1b8] sm:$0xff]  ;;  %v2411_v11 = vpack.c.bf16 %v176_v5, %v172_v3  ;;  %v178_v13 = vld [vmem:[#allocation5 + $0x180] sm:$0xff] }
  0x91   :  { %2404 = vmatpush1.bf16.msra.mxu1 %v2403_v51  ;;  %2182 = vmatprep.subr.bf16.mxu0 %v2181_v52  ;;  %v2189_v12 = vpack.c.bf16 %v183_v7, %v179_v6  ;;  %v182_v14 = vld [vmem:[#allocation5 + $0x1a0] sm:$0xff]  ;;  %v180_v15 = vld [vmem:[#allocation5 + $0x190] sm:$0xff]  ;;  %v2413_v16 = vpack.c.bf16 %v185_v9, %v181_v8  ;;  %v187_v18 = vld [vmem:[#allocation5 + $0x1c8] sm:$0xff] }
  0x92   :  { %2406 = vmatprep.subr.bf16.mxu1 %v2405_v56  ;;  %v184_v17 = vld [vmem:[#allocation5 + $0x1b0] sm:$0xff]  ;;  %v191_v19 = vld [vmem:[#allocation5 + $0x1e8] sm:$0xff]  ;;  %v189_v20 = vld [vmem:[#allocation5 + $0x1d8] sm:$0xff]  ;;  %v2191_v22 = vpack.c.bf16 %v182_v14, %v178_v13 }
  0x93   :  { %v193_v21 = vld [vmem:[#allocation5 + $0x1f8] sm:$0xff]  ;;  %v2415_v23 = vpack.c.bf16 %v184_v17, %v180_v15  ;;  %v2193_v24 = vpack.c.bf16 %v191_v19, %v187_v18  ;;  %v186_v25 = vld [vmem:[#allocation5 + $0x1c0] sm:$0xff]  ;;  %v188_v27 = vld [vmem:[#allocation5 + $0x1d0] sm:$0xff] }
  0x94   :  { %2184 = vmatpush1.bf16.msra.mxu0 %v2183_v62  ;;  %v190_v26 = vld [vmem:[#allocation5 + $0x1e0] sm:$0xff]  ;;  %v2417_v28 = vpack.c.bf16 %v193_v21, %v189_v20  ;;  %v192_v29 = vld [vmem:[#allocation5 + $0x1f0] sm:$0xff]  ;;  %v195_v30 = vld [vmem:[#allocation5 + $0x208] sm:$0xff] }
  0x95   :  { %2408 = vmatpush1.bf16.msra.mxu1 %v2407_v63  ;;  %2186 = vmatprep.subr.bf16.mxu0 %v2185_v0  ;;  %v199_v31 = vld [vmem:[#allocation5 + $0x228] sm:$0xff]  ;;  %v197_v32 = vld [vmem:[#allocation5 + $0x218] sm:$0xff]  ;;  %v2195_v34 = vpack.c.bf16 %v190_v26, %v186_v25  ;;  %v2419_v35 = vpack.c.bf16 %v192_v29, %v188_v27  ;;  %v194_v37 = vld [vmem:[#allocation5 + $0x200] sm:$0xff] }
  0x96   :  { %2410 = vmatprep.subr.bf16.mxu1 %v2409_v4  ;;  %v201_v33 = vld [vmem:[#allocation5 + $0x238] sm:$0xff]  ;;  %v2197_v36 = vpack.c.bf16 %v199_v31, %v195_v30  ;;  %v198_v38 = vld [vmem:[#allocation5 + $0x220] sm:$0xff]  ;;  %v196_v39 = vld [vmem:[#allocation5 + $0x210] sm:$0xff] }
  0x97   :  { %v2421_v40 = vpack.c.bf16 %v201_v33, %v197_v32  ;;  %v200_v41 = vld [vmem:[#allocation5 + $0x230] sm:$0xff]  ;;  %v203_v42 = vld [vmem:[#allocation5 + $0x248] sm:$0xff]  ;;  %v205_v44 = vld [vmem:[#allocation5 + $0x258] sm:$0xff]  ;;  %v2199_v46 = vpack.c.bf16 %v198_v38, %v194_v37 }
  0x98   :  { %2188 = vmatpush1.bf16.msra.mxu0 %v2187_v10  ;;  %v207_v43 = vld [vmem:[#allocation5 + $0x268] sm:$0xff]  ;;  %v209_v45 = vld [vmem:[#allocation5 + $0x278] sm:$0xff]  ;;  %v2423_v47 = vpack.c.bf16 %v200_v41, %v196_v39  ;;  %v202_v49 = vld [vmem:[#allocation5 + $0x240] sm:$0xff] }
  0x99   :  { %2412 = vmatpush1.bf16.msra.mxu1 %v2411_v11  ;;  %2190 = vmatprep.subr.bf16.mxu0 %v2189_v12  ;;  %v2201_v48 = vpack.c.bf16 %v207_v43, %v203_v42  ;;  %v206_v50 = vld [vmem:[#allocation5 + $0x260] sm:$0xff]  ;;  %v204_v51 = vld [vmem:[#allocation5 + $0x250] sm:$0xff]  ;;  %v2425_v52 = vpack.c.bf16 %v209_v45, %v205_v44  ;;  %v211_v54 = vld [vmem:[#allocation5 + $0x288] sm:$0xff] }
  0x9a   :  { %2414 = vmatprep.subr.bf16.mxu1 %v2413_v16  ;;  %v208_v53 = vld [vmem:[#allocation5 + $0x270] sm:$0xff]  ;;  %v215_v55 = vld [vmem:[#allocation5 + $0x2a8] sm:$0xff]  ;;  %v213_v56 = vld [vmem:[#allocation5 + $0x298] sm:$0xff]  ;;  %v2203_v58 = vpack.c.bf16 %v206_v50, %v202_v49 }
  0x9b   :  { %v217_v57 = vld [vmem:[#allocation5 + $0x2b8] sm:$0xff]  ;;  %v2427_v59 = vpack.c.bf16 %v208_v53, %v204_v51  ;;  %v2205_v60 = vpack.c.bf16 %v215_v55, %v211_v54  ;;  %v210_v61 = vld [vmem:[#allocation5 + $0x280] sm:$0xff]  ;;  %v212_v63 = vld [vmem:[#allocation5 + $0x290] sm:$0xff] }
  0x9c   :  { %2192 = vmatpush1.bf16.msra.mxu0 %v2191_v22  ;;  %v214_v62 = vld [vmem:[#allocation5 + $0x2a0] sm:$0xff]  ;;  %v2429_v0 = vpack.c.bf16 %v217_v57, %v213_v56  ;;  %v216_v1 = vld [vmem:[#allocation5 + $0x2b0] sm:$0xff]  ;;  %v219_v2 = vld [vmem:[#allocation5 + $0x2c8] sm:$0xff] }
  0x9d   :  { %2416 = vmatpush1.bf16.msra.mxu1 %v2415_v23  ;;  %2194 = vmatprep.subr.bf16.mxu0 %v2193_v24  ;;  %v223_v3 = vld [vmem:[#allocation5 + $0x2e8] sm:$0xff]  ;;  %v221_v4 = vld [vmem:[#allocation5 + $0x2d8] sm:$0xff]  ;;  %v2207_v6 = vpack.c.bf16 %v214_v62, %v210_v61  ;;  %v218_v7 = vld [vmem:[#allocation5 + $0x2c0] sm:$0xff]  ;;  %v2431_v8 = vpack.c.bf16 %v216_v1, %v212_v63 }
  0x9e   :  { %2418 = vmatprep.subr.bf16.mxu1 %v2417_v28  ;;  %v225_v5 = vld [vmem:[#allocation5 + $0x2f8] sm:$0xff]  ;;  %v2209_v9 = vpack.c.bf16 %v223_v3, %v219_v2  ;;  %v222_v10 = vld [vmem:[#allocation5 + $0x2e0] sm:$0xff]  ;;  %v220_v11 = vld [vmem:[#allocation5 + $0x2d0] sm:$0xff] }
  0x9f   :  { %v224_v12 = vld [vmem:[#allocation5 + $0x2f0] sm:$0xff]  ;;  %v2433_v13 = vpack.c.bf16 %v225_v5, %v221_v4  ;;  %v227_v14 = vld [vmem:[#allocation5 + $0x308] sm:$0xff]  ;;  %v117_v16 = vld [vmem:[#allocation2 + $0x8] sm:$0xff]  ;;  %v2211_v19 = vpack.c.bf16 %v222_v10, %v218_v7 }
  0xa0   :  { %2196 = vmatpush1.bf16.msra.mxu0 %v2195_v34  ;;  %v231_v15 = vld [vmem:[#allocation5 + $0x328] sm:$0xff]  ;;  %v229_v17 = vld [vmem:[#allocation5 + $0x318] sm:$0xff]  ;;  %664 = vmatprep.mubr.f32.mxu0 %v117_v16  ;;  %v2435_v20 = vpack.c.bf16 %v224_v12, %v220_v11  ;;  %v226_v22 = vld [vmem:[#allocation5 + $0x300] sm:$0xff] }
  0xa1   :  { %2420 = vmatpush1.bf16.msra.mxu1 %v2419_v35  ;;  %2198 = vmatprep.subr.bf16.mxu0 %v2197_v36  ;;  %v233_v18 = vld [vmem:[#allocation5 + $0x338] sm:$0xff]  ;;  %v2213_v21 = vpack.c.bf16 %v231_v15, %v227_v14  ;;  %v230_v23 = vld [vmem:[#allocation5 + $0x320] sm:$0xff]  ;;  %v228_v24 = vld [vmem:[#allocation5 + $0x310] sm:$0xff] }
  0xa2   :  { %2422 = vmatprep.subr.bf16.mxu1 %v2421_v40  ;;  %972 = vmatprep.mubr.f32.mxu1 %v117_v16  ;;  %v2437_v25 = vpack.c.bf16 %v233_v18, %v229_v17  ;;  %v232_v26 = vld [vmem:[#allocation5 + $0x330] sm:$0xff]  ;;  %v235_v27 = vld [vmem:[#allocation5 + $0x348] sm:$0xff]  ;;  %v237_v29 = vld [vmem:[#allocation5 + $0x358] sm:$0xff]  ;;  %v2215_v31 = vpack.c.bf16 %v230_v23, %v226_v22 }
  0xa3   :  { %v239_v28 = vld [vmem:[#allocation5 + $0x368] sm:$0xff]  ;;  %v241_v30 = vld [vmem:[#allocation5 + $0x378] sm:$0xff]  ;;  %v2439_v32 = vpack.c.bf16 %v232_v26, %v228_v24  ;;  %v234_v34 = vld [vmem:[#allocation5 + $0x340] sm:$0xff] }
  0xa4   :  { %2200 = vmatpush1.bf16.msra.mxu0 %v2199_v46  ;;  %v2217_v33 = vpack.c.bf16 %v239_v28, %v235_v27  ;;  %v238_v35 = vld [vmem:[#allocation5 + $0x360] sm:$0xff]  ;;  %v236_v36 = vld [vmem:[#allocation5 + $0x350] sm:$0xff]  ;;  %v2441_v37 = vpack.c.bf16 %v241_v30, %v237_v29  ;;  %v243_v39 = vld [vmem:[#allocation5 + $0x388] sm:$0xff] }
  0xa5   :  { %2424 = vmatpush1.bf16.msra.mxu1 %v2423_v47  ;;  %2202 = vmatprep.subr.bf16.mxu0 %v2201_v48  ;;  %v240_v38 = vld [vmem:[#allocation5 + $0x370] sm:$0xff]  ;;  %v247_v40 = vld [vmem:[#allocation5 + $0x3a8] sm:$0xff]  ;;  %v245_v41 = vld [vmem:[#allocation5 + $0x398] sm:$0xff]  ;;  %v2219_v43 = vpack.c.bf16 %v238_v35, %v234_v34 }
  0xa6   :  { %2426 = vmatprep.subr.bf16.mxu1 %v2425_v52  ;;  %v249_v42 = vld [vmem:[#allocation5 + $0x3b8] sm:$0xff]  ;;  %v2443_v44 = vpack.c.bf16 %v240_v38, %v236_v36  ;;  %v2221_v45 = vpack.c.bf16 %v247_v40, %v243_v39  ;;  %v242_v46 = vld [vmem:[#allocation5 + $0x380] sm:$0xff]  ;;  %v244_v48 = vld [vmem:[#allocation5 + $0x390] sm:$0xff] }
  0xa7   :  { %v246_v47 = vld [vmem:[#allocation5 + $0x3a0] sm:$0xff]  ;;  %v2445_v49 = vpack.c.bf16 %v249_v42, %v245_v41  ;;  %v248_v50 = vld [vmem:[#allocation5 + $0x3b0] sm:$0xff]  ;;  %v251_v51 = vld [vmem:[#allocation5 + $0x3c8] sm:$0xff] }
  0xa8   :  { %2204 = vmatpush1.bf16.msra.mxu0 %v2203_v58  ;;  %v255_v52 = vld [vmem:[#allocation5 + $0x3e8] sm:$0xff]  ;;  %v253_v53 = vld [vmem:[#allocation5 + $0x3d8] sm:$0xff]  ;;  %v2223_v55 = vpack.c.bf16 %v246_v47, %v242_v46  ;;  %v2447_v56 = vpack.c.bf16 %v248_v50, %v244_v48  ;;  %v250_v58 = vld [vmem:[#allocation5 + $0x3c0] sm:$0xff] }
  0xa9   :  { %2428 = vmatpush1.bf16.msra.mxu1 %v2427_v59  ;;  %2206 = vmatprep.subr.bf16.mxu0 %v2205_v60  ;;  %v257_v54 = vld [vmem:[#allocation5 + $0x3f8] sm:$0xff]  ;;  %v2225_v57 = vpack.c.bf16 %v255_v52, %v251_v51  ;;  %v254_v59 = vld [vmem:[#allocation5 + $0x3e0] sm:$0xff]  ;;  %v252_v60 = vld [vmem:[#allocation5 + $0x3d0] sm:$0xff] }
  0xaa   :  { %2430 = vmatprep.subr.bf16.mxu1 %v2429_v0  ;;  %v2449_v61 = vpack.c.bf16 %v257_v54, %v253_v53  ;;  %v256_v62 = vld [vmem:[#allocation5 + $0x3f0] sm:$0xff]  ;;  %v259_v63 = vld [vmem:[#allocation5 + $0x408] sm:$0xff]  ;;  %v261_v1 = vld [vmem:[#allocation5 + $0x418] sm:$0xff]  ;;  %v2227_v3 = vpack.c.bf16 %v254_v59, %v250_v58 }
  0xab   :  { %v263_v0 = vld [vmem:[#allocation5 + $0x428] sm:$0xff]  ;;  %v265_v2 = vld [vmem:[#allocation5 + $0x438] sm:$0xff]  ;;  %v2451_v4 = vpack.c.bf16 %v256_v62, %v252_v60  ;;  %v262_v7 = vld [vmem:[#allocation5 + $0x420] sm:$0xff] }
  0xac   :  { %2208 = vmatpush1.bf16.msra.mxu0 %v2207_v6  ;;  %v2229_v5 = vpack.c.bf16 %v263_v0, %v259_v63  ;;  %v258_v6 = vld [vmem:[#allocation5 + $0x400] sm:$0xff]  ;;  %v264_v10 = vld [vmem:[#allocation5 + $0x430] sm:$0xff]  ;;  %v267_v11 = vld [vmem:[#allocation5 + $0x448] sm:$0xff] }
  0xad   :  { %2432 = vmatpush1.bf16.msra.mxu1 %v2431_v8  ;;  %2210 = vmatprep.subr.bf16.mxu0 %v2209_v9  ;;  %v260_v8 = vld [vmem:[#allocation5 + $0x410] sm:$0xff]  ;;  %v2453_v9 = vpack.c.bf16 %v265_v2, %v261_v1  ;;  %v271_v12 = vld [vmem:[#allocation5 + $0x468] sm:$0xff]  ;;  %v273_v14 = vld [vmem:[#allocation5 + $0x478] sm:$0xff]  ;;  %v2231_v16 = vpack.c.bf16 %v262_v7, %v258_v6 }
  0xae   :  { %2434 = vmatprep.subr.bf16.mxu1 %v2433_v13  ;;  %v269_v13 = vld [vmem:[#allocation5 + $0x458] sm:$0xff]  ;;  %v116_v15 = vld [vmem:[#allocation2] sm:$0xff]  ;;  %v2455_v17 = vpack.c.bf16 %v264_v10, %v260_v8  ;;  %v2233_v18 = vpack.c.bf16 %v271_v12, %v267_v11  ;;  %v275_v24 = vld [vmem:[#allocation5 + $0x488] sm:$0xff] }
  0xaf   :  { %v2457_v22 = vpack.c.bf16 %v273_v14, %v269_v13  ;;  %v272_v23 = vld [vmem:[#allocation5 + $0x470] sm:$0xff]  ;;  %v277_v26 = vld [vmem:[#allocation5 + $0x498] sm:$0xff]  ;;  %v283_v36 = vld [vmem:[#allocation5 + $0x4c8] sm:$0xff] }
  0xb0   :  { %2212 = vmatpush1.bf16.msra.mxu0 %v2211_v19  ;;  %v266_v19 = vld [vmem:[#allocation5 + $0x440] sm:$0xff]  ;;  %v281_v27 = vld [vmem:[#allocation5 + $0x4b8] sm:$0xff]  ;;  %v280_v35 = vld [vmem:[#allocation5 + $0x4b0] sm:$0xff] }
  0xb1   :  { %2436 = vmatpush1.bf16.msra.mxu1 %v2435_v20  ;;  %2214 = vmatprep.subr.bf16.mxu0 %v2213_v21  ;;  %v270_v20 = vld [vmem:[#allocation5 + $0x460] sm:$0xff]  ;;  %v268_v21 = vld [vmem:[#allocation5 + $0x450] sm:$0xff]  ;;  %v2461_v34 = vpack.c.bf16 %v281_v27, %v277_v26  ;;  %v285_v38 = vld [vmem:[#allocation5 + $0x4d8] sm:$0xff] }
  0xb2   :  { %2438 = vmatprep.subr.bf16.mxu1 %v2437_v25  ;;  %v279_v25 = vld [vmem:[#allocation5 + $0x4a8] sm:$0xff]  ;;  %v2235_v28 = vpack.c.bf16 %v270_v20, %v266_v19  ;;  %v2459_v29 = vpack.c.bf16 %v272_v23, %v268_v21  ;;  %v289_v39 = vld [vmem:[#allocation5 + $0x4f8] sm:$0xff]  ;;  %v288_v47 = vld [vmem:[#allocation5 + $0x4f0] sm:$0xff] }
  0xb3   :  { %v2237_v30 = vpack.c.bf16 %v279_v25, %v275_v24  ;;  %v2465_v46 = vpack.c.bf16 %v289_v39, %v285_v38  ;;  %v291_v48 = vld [vmem:[#allocation5 + $0x508] sm:$0xff]  ;;  %v293_v50 = vld [vmem:[#allocation5 + $0x518] sm:$0xff]  ;;  %v296_v59 = vld [vmem:[#allocation5 + $0x530] sm:$0xff] }
  0xb4   :  { %2216 = vmatpush1.bf16.msra.mxu0 %v2215_v31  ;;  %v274_v31 = vld [vmem:[#allocation5 + $0x480] sm:$0xff]  ;;  %v297_v51 = vld [vmem:[#allocation5 + $0x538] sm:$0xff]  ;;  %v299_v60 = vld [vmem:[#allocation5 + $0x548] sm:$0xff] }
  0xb5   :  { %2440 = vmatpush1.bf16.msra.mxu1 %v2439_v32  ;;  %2218 = vmatprep.subr.bf16.mxu0 %v2217_v33  ;;  %v278_v32 = vld [vmem:[#allocation5 + $0x4a0] sm:$0xff]  ;;  %v276_v33 = vld [vmem:[#allocation5 + $0x490] sm:$0xff]  ;;  %v2469_v58 = vpack.c.bf16 %v297_v51, %v293_v50  ;;  %v301_v62 = vld [vmem:[#allocation5 + $0x558] sm:$0xff] }
  0xb6   :  { %2442 = vmatprep.subr.bf16.mxu1 %v2441_v37  ;;  %v287_v37 = vld [vmem:[#allocation5 + $0x4e8] sm:$0xff]  ;;  %v2239_v40 = vpack.c.bf16 %v278_v32, %v274_v31  ;;  %v2463_v41 = vpack.c.bf16 %v280_v35, %v276_v33  ;;  %v305_v63 = vld [vmem:[#allocation5 + $0x578] sm:$0xff]  ;;  %v304_v7 = vld [vmem:[#allocation5 + $0x570] sm:$0xff] }
  0xb7   :  { %v2241_v42 = vpack.c.bf16 %v287_v37, %v283_v36  ;;  %v2473_v6 = vpack.c.bf16 %v305_v63, %v301_v62  ;;  %v307_v8 = vld [vmem:[#allocation5 + $0x588] sm:$0xff]  ;;  %v309_v10 = vld [vmem:[#allocation5 + $0x598] sm:$0xff]  ;;  %v124_v12 = vld [vmem:[#allocation2 + $0x40] sm:$0xff] }
  0xb8   :  { %2220 = vmatpush1.bf16.msra.mxu0 %v2219_v43  ;;  %v282_v43 = vld [vmem:[#allocation5 + $0x4c0] sm:$0xff]  ;;  %v313_v11 = vld [vmem:[#allocation5 + $0x5b8] sm:$0xff]  ;;  %v312_v19 = vld [vmem:[#allocation5 + $0x5b0] sm:$0xff] }
  0xb9   :  { %2444 = vmatpush1.bf16.msra.mxu1 %v2443_v44  ;;  %2222 = vmatprep.subr.bf16.mxu0 %v2221_v45  ;;  %v286_v44 = vld [vmem:[#allocation5 + $0x4e0] sm:$0xff]  ;;  %v284_v45 = vld [vmem:[#allocation5 + $0x4d0] sm:$0xff]  ;;  %v123_v20 = vld [vmem:[#allocation2 + $0x38] sm:$0xff]  ;;  %v2477_v21 = vpack.c.bf16 %v313_v11, %v309_v10 }
  0xba   :  { %2446 = vmatprep.subr.bf16.mxu1 %v2445_v49  ;;  %v295_v49 = vld [vmem:[#allocation5 + $0x528] sm:$0xff]  ;;  %v2243_v52 = vpack.c.bf16 %v286_v44, %v282_v43  ;;  %v2467_v53 = vpack.c.bf16 %v288_v47, %v284_v45  ;;  %v306_v14 = vld [vmem:[#allocation5 + $0x580] sm:$0xff]  ;;  %v317_v25 = vld [vmem:[#allocation5 + $0x5d8] sm:$0xff] }
  0xbb   :  { %v2245_v54 = vpack.c.bf16 %v295_v49, %v291_v48  ;;  %v319_v23 = vld [vmem:[#allocation5 + $0x5e8] sm:$0xff]  ;;  %v321_v26 = vld [vmem:[#allocation5 + $0x5f8] sm:$0xff]  ;;  %v318_v31 = vld [vmem:[#allocation5 + $0x5e0] sm:$0xff] }
  0xbc   :  { %2224 = vmatpush1.bf16.msra.mxu0 %v2223_v55  ;;  %v290_v55 = vld [vmem:[#allocation5 + $0x500] sm:$0xff]  ;;  %v119_v24 = vld [vmem:[#allocation2 + $0x18] sm:$0xff]  ;;  %v316_v32 = vld [vmem:[#allocation5 + $0x5d0] sm:$0xff]  ;;  %v2481_v33 = vpack.c.bf16 %v321_v26, %v317_v25 }
  0xbd   :  { %2448 = vmatpush1.bf16.msra.mxu1 %v2447_v56  ;;  %2226 = vmatprep.subr.bf16.mxu0 %v2225_v57  ;;  %v294_v56 = vld [vmem:[#allocation5 + $0x520] sm:$0xff]  ;;  %v292_v57 = vld [vmem:[#allocation5 + $0x510] sm:$0xff]  ;;  %v323_v35 = vld [vmem:[#allocation5 + $0x608] sm:$0xff] }
  0xbe   :  { %2450 = vmatprep.subr.bf16.mxu1 %v2449_v61  ;;  %v303_v61 = vld [vmem:[#allocation5 + $0x568] sm:$0xff]  ;;  %v2247_v0 = vpack.c.bf16 %v294_v56, %v290_v55  ;;  %v2471_v1 = vpack.c.bf16 %v296_v59, %v292_v57  ;;  %v325_v37 = vld [vmem:[#allocation5 + $0x618] sm:$0xff]  ;;  %v326_v43 = vld [vmem:[#allocation5 + $0x620] sm:$0xff] }
  0xbf   :  { %v2249_v2 = vpack.c.bf16 %v303_v61, %v299_v60  ;;  %v327_v36 = vld [vmem:[#allocation5 + $0x628] sm:$0xff]  ;;  %v329_v38 = vld [vmem:[#allocation5 + $0x638] sm:$0xff]  ;;  %v324_v44 = vld [vmem:[#allocation5 + $0x610] sm:$0xff] }
  0xc0   :  { %2228 = vmatpush1.bf16.msra.mxu0 %v2227_v3  ;;  %v298_v3 = vld [vmem:[#allocation5 + $0x540] sm:$0xff]  ;;  %v2485_v45 = vpack.c.bf16 %v329_v38, %v325_v37  ;;  %v331_v47 = vld [vmem:[#allocation5 + $0x648] sm:$0xff]  ;;  %v333_v49 = vld [vmem:[#allocation5 + $0x658] sm:$0xff] }
  0xc1   :  { %2452 = vmatpush1.bf16.msra.mxu1 %v2451_v4  ;;  %2230 = vmatprep.subr.bf16.mxu0 %v2229_v5  ;;  %v302_v4 = vld [vmem:[#allocation5 + $0x560] sm:$0xff]  ;;  %v300_v5 = vld [vmem:[#allocation5 + $0x550] sm:$0xff]  ;;  %v335_v48 = vld [vmem:[#allocation5 + $0x668] sm:$0xff] }
  0xc2   :  { %2454 = vmatprep.subr.bf16.mxu1 %v2453_v9  ;;  %v311_v9 = vld [vmem:[#allocation5 + $0x5a8] sm:$0xff]  ;;  %v2251_v13 = vpack.c.bf16 %v302_v4, %v298_v3  ;;  %v337_v50 = vld [vmem:[#allocation5 + $0x678] sm:$0xff]  ;;  %v334_v55 = vld [vmem:[#allocation5 + $0x660] sm:$0xff] }
  0xc3   :  { %665 = vmatmul.mubr.f32.vlgmr.msra.gmra.mrb[0].mxu0 %v116_v15  ;;  %v332_v56 = vld [vmem:[#allocation5 + $0x650] sm:$0xff]  ;;  %v2489_v57 = vpack.c.bf16 %v337_v50, %v333_v49  ;;  %v339_v59 = vld [vmem:[#allocation5 + $0x688] sm:$0xff]  ;;  %v341_v61 = vld [vmem:[#allocation5 + $0x698] sm:$0xff] }
  0xc4   :  { %2232 = vmatpush1.bf16.msra.mxu0 %v2231_v16  ;;  %973 = vmatmul.mubr.f32.vlgmr.msra.gmra.mrb[0].mxu1 %v116_v15  ;;  %v310_v15 = vld [vmem:[#allocation5 + $0x5a0] sm:$0xff]  ;;  %v2475_v16 = vpack.c.bf16 %v304_v7, %v300_v5  ;;  %v343_v60 = vld [vmem:[#allocation5 + $0x6a8] sm:$0xff]  ;;  %v345_v62 = vld [vmem:[#allocation5 + $0x6b8] sm:$0xff] }
  0xc5   :  { %2456 = vmatpush1.bf16.msra.mxu1 %v2455_v17  ;;  %2234 = vmatprep.subr.bf16.mxu0 %v2233_v18  ;;  %v2253_v17 = vpack.c.bf16 %v311_v9, %v307_v8  ;;  %v308_v18 = vld [vmem:[#allocation5 + $0x590] sm:$0xff]  ;;  %v2255_v27 = vpack.c.bf16 %v310_v15, %v306_v14  ;;  %v342_v3 = vld [vmem:[#allocation5 + $0x6a0] sm:$0xff]  ;;  %v2493_v5 = vpack.c.bf16 %v345_v62, %v341_v61  ;;  %v347_v7 = vld [vmem:[#allocation5 + $0x6c8] sm:$0xff] }
  0xc6   :  { %2458 = vmatprep.subr.bf16.mxu1 %v2457_v22  ;;  %670 = vmatprep.mubr.f32.mxu0 %v124_v12  ;;  %v315_v22 = vld [vmem:[#allocation5 + $0x5c8] sm:$0xff]  ;;  %v340_v4 = vld [vmem:[#allocation5 + $0x690] sm:$0xff]  ;;  %v349_v9 = vld [vmem:[#allocation5 + $0x6d8] sm:$0xff] }
  0xc7   :  { %978 = vmatprep.mubr.f32.mxu1 %v124_v12  ;;  %671 = vmatmul.mubr.f32.gmra.mrb[2].mxu0 %v123_v20  ;;  %v351_v8 = vld [vmem:[#allocation5 + $0x6e8] sm:$0xff]  ;;  %v353_v10 = vld [vmem:[#allocation5 + $0x6f8] sm:$0xff]  ;;  %v346_v14 = vld [vmem:[#allocation5 + $0x6c0] sm:$0xff] }
  0xc8   :  { %2236 = vmatpush1.bf16.msra.mxu0 %v2235_v28  ;;  %979 = vmatmul.mubr.f32.gmra.mrb[2].mxu1 %v123_v20  ;;  %v2479_v28 = vpack.c.bf16 %v312_v19, %v308_v18  ;;  %v350_v15 = vld [vmem:[#allocation5 + $0x6e0] sm:$0xff]  ;;  %v352_v18 = vld [vmem:[#allocation5 + $0x6f0] sm:$0xff]  ;;  %v355_v19 = vld [vmem:[#allocation5 + $0x708] sm:$0xff] }
  0xc9   :  { %2460 = vmatpush1.bf16.msra.mxu1 %v2459_v29  ;;  %2238 = vmatprep.subr.bf16.mxu0 %v2237_v30  ;;  %v2257_v29 = vpack.c.bf16 %v319_v23, %v315_v22  ;;  %v314_v30 = vld [vmem:[#allocation5 + $0x5c0] sm:$0xff]  ;;  %v359_v20 = vld [vmem:[#allocation5 + $0x728] sm:$0xff]  ;;  %v361_v22 = vld [vmem:[#allocation5 + $0x738] sm:$0xff]  ;;  %v2275_v23 = vpack.c.bf16 %v350_v15, %v346_v14 }
  0xca   :  { %2462 = vmatprep.subr.bf16.mxu1 %v2461_v34  ;;  %741 = vmatprep.mubr.f32.mxu0 %v119_v24  ;;  %v320_v34 = vld [vmem:[#allocation5 + $0x5f0] sm:$0xff]  ;;  %v2259_v39 = vpack.c.bf16 %v318_v31, %v314_v30  ;;  %v2277_v25 = vpack.c.bf16 %v359_v20, %v355_v19  ;;  %v354_v26 = vld [vmem:[#allocation5 + $0x700] sm:$0xff]  ;;  %v363_v31 = vld [vmem:[#allocation5 + $0x748] sm:$0xff] }
  0xcb   :  { %1049 = vmatprep.mubr.f32.mxu1 %v119_v24  ;;  %v360_v30 = vld [vmem:[#allocation5 + $0x730] sm:$0xff]  ;;  %v362_v38 = vld [vmem:[#allocation5 + $0x740] sm:$0xff]  ;;  %v395_v15 = vld [vmem:[#allocation5 + $0x848] sm:$0xff] }
  0xcc   :  { %2240 = vmatpush1.bf16.msra.mxu0 %v2239_v40  ;;  %v2483_v40 = vpack.c.bf16 %v320_v34, %v316_v32  ;;  %v367_v32 = vld [vmem:[#allocation5 + $0x768] sm:$0xff]  ;;  %v369_v34 = vld [vmem:[#allocation5 + $0x778] sm:$0xff]  ;;  %v370_v50 = vld [vmem:[#allocation5 + $0x780] sm:$0xff] }
  0xcd   :  { %2464 = vmatpush1.bf16.msra.mxu1 %v2463_v41  ;;  %2242 = vmatprep.subr.bf16.mxu0 %v2241_v42  ;;  %v2261_v41 = vpack.c.bf16 %v327_v36, %v323_v35  ;;  %v322_v42 = vld [vmem:[#allocation5 + $0x600] sm:$0xff]  ;;  %v2281_v37 = vpack.c.bf16 %v367_v32, %v363_v31  ;;  %v392_v14 = vld [vmem:[#allocation5 + $0x830] sm:$0xff]  ;;  %v409_v31 = vld [vmem:[#allocation5 + $0x8b8] sm:$0xff] }
  0xce   :  { %2466 = vmatprep.subr.bf16.mxu1 %v2465_v46  ;;  %v328_v46 = vld [vmem:[#allocation5 + $0x630] sm:$0xff]  ;;  %v2263_v51 = vpack.c.bf16 %v326_v43, %v322_v42  ;;  %v371_v43 = vld [vmem:[#allocation5 + $0x788] sm:$0xff]  ;;  %v378_v62 = vld [vmem:[#allocation5 + $0x7c0] sm:$0xff] }
  0xcf   :  { %v368_v42 = vld [vmem:[#allocation5 + $0x770] sm:$0xff]  ;;  %v118_v19 = vld [vmem:[#allocation2 + $0x10] sm:$0xff] }
  0xd0   :  { %2244 = vmatpush1.bf16.msra.mxu0 %v2243_v52  ;;  %v2487_v52 = vpack.c.bf16 %v328_v46, %v324_v44  ;;  %v375_v44 = vld [vmem:[#allocation5 + $0x7a8] sm:$0xff]  ;;  %v377_v46 = vld [vmem:[#allocation5 + $0x7b8] sm:$0xff]  ;;  %v126_v32 = vld [vmem:[#allocation2 + $0x50] sm:$0xff] }
  0xd1   :  { %2468 = vmatpush1.bf16.msra.mxu1 %v2467_v53  ;;  %2246 = vmatprep.subr.bf16.mxu0 %v2245_v54  ;;  %v2265_v53 = vpack.c.bf16 %v335_v48, %v331_v47  ;;  %v330_v54 = vld [vmem:[#allocation5 + $0x640] sm:$0xff]  ;;  %v2285_v49 = vpack.c.bf16 %v375_v44, %v371_v43  ;;  %v415_v43 = vld [vmem:[#allocation5 + $0x8e8] sm:$0xff]  ;;  %v413_v44 = vld [vmem:[#allocation5 + $0x8d8] sm:$0xff] }
  0xd2   :  { %2470 = vmatprep.subr.bf16.mxu1 %v2469_v58  ;;  %v336_v58 = vld [vmem:[#allocation5 + $0x670] sm:$0xff]  ;;  %v2267_v63 = vpack.c.bf16 %v334_v55, %v330_v54  ;;  %v379_v55 = vld [vmem:[#allocation5 + $0x7c8] sm:$0xff] }
  0xd3   :  { %v376_v54 = vld [vmem:[#allocation5 + $0x7b0] sm:$0xff] }
  0xd4   :  { %2248 = vmatpush1.bf16.msra.mxu0 %v2247_v0  ;;  %v2491_v0 = vpack.c.bf16 %v336_v58, %v332_v56  ;;  %v383_v56 = vld [vmem:[#allocation5 + $0x7e8] sm:$0xff]  ;;  %v385_v58 = vld [vmem:[#allocation5 + $0x7f8] sm:$0xff] }
  0xd5   :  { %2472 = vmatpush1.bf16.msra.mxu1 %v2471_v1  ;;  %2250 = vmatprep.subr.bf16.mxu0 %v2249_v2  ;;  %v2269_v1 = vpack.c.bf16 %v343_v60, %v339_v59  ;;  %v338_v2 = vld [vmem:[#allocation5 + $0x680] sm:$0xff]  ;;  %v2289_v61 = vpack.c.bf16 %v383_v56, %v379_v55  ;;  %v419_v55 = vld [vmem:[#allocation5 + $0x908] sm:$0xff] }
  0xd6   :  { %2474 = vmatprep.subr.bf16.mxu1 %v2473_v6  ;;  %v344_v6 = vld [vmem:[#allocation5 + $0x6b0] sm:$0xff]  ;;  %v2271_v11 = vpack.c.bf16 %v342_v3, %v338_v2  ;;  %v387_v3 = vld [vmem:[#allocation5 + $0x808] sm:$0xff] }
  0xd7   :  { %v2495_v12 = vpack.c.bf16 %v344_v6, %v340_v4  ;;  %v384_v2 = vld [vmem:[#allocation5 + $0x7f0] sm:$0xff]  ;;  %v391_v4 = vld [vmem:[#allocation5 + $0x828] sm:$0xff]  ;;  %v393_v6 = vld [vmem:[#allocation5 + $0x838] sm:$0xff] }
  0xd8   :  { %2252 = vmatpush1.bf16.msra.mxu0 %v2251_v13  ;;  %v2273_v13 = vpack.c.bf16 %v351_v8, %v347_v7  ;;  %v423_v56 = vld [vmem:[#allocation5 + $0x928] sm:$0xff] }
  0xd9   :  { %2476 = vmatpush1.bf16.msra.mxu1 %v2475_v16  ;;  %2254 = vmatprep.subr.bf16.mxu0 %v2253_v17  ;;  %v348_v16 = vld [vmem:[#allocation5 + $0x6d0] sm:$0xff]  ;;  %v2497_v17 = vpack.c.bf16 %v353_v10, %v349_v9  ;;  %v2293_v9 = vpack.c.bf16 %v391_v4, %v387_v3  ;;  %v386_v10 = vld [vmem:[#allocation5 + $0x800] sm:$0xff]  ;;  %v427_v3 = vld [vmem:[#allocation5 + $0x948] sm:$0xff] }
  0xda   :  { %2478 = vmatprep.subr.bf16.mxu1 %v2477_v21  ;;  %v357_v21 = vld [vmem:[#allocation5 + $0x718] sm:$0xff]  ;;  %v2499_v24 = vpack.c.bf16 %v352_v18, %v348_v16  ;;  %v399_v16 = vld [vmem:[#allocation5 + $0x868] sm:$0xff] }
  0xdb   :  { %v401_v18 = vld [vmem:[#allocation5 + $0x878] sm:$0xff]  ;;  %v431_v4 = vld [vmem:[#allocation5 + $0x968] sm:$0xff] }
  0xdc   :  { %2256 = vmatpush1.bf16.msra.mxu0 %v2255_v27  ;;  %v358_v27 = vld [vmem:[#allocation5 + $0x720] sm:$0xff] }
  0xdd   :  { %2480 = vmatpush1.bf16.msra.mxu1 %v2479_v28  ;;  %2258 = vmatprep.subr.bf16.mxu0 %v2257_v29  ;;  %v356_v28 = vld [vmem:[#allocation5 + $0x710] sm:$0xff]  ;;  %v2501_v29 = vpack.c.bf16 %v361_v22, %v357_v21  ;;  %v2279_v35 = vpack.c.bf16 %v358_v27, %v354_v26  ;;  %v2297_v22 = vpack.c.bf16 %v399_v16, %v395_v15  ;;  %v435_v15 = vld [vmem:[#allocation5 + $0x988] sm:$0xff] }
  0xde   :  { %2482 = vmatprep.subr.bf16.mxu1 %v2481_v33  ;;  %v365_v33 = vld [vmem:[#allocation5 + $0x758] sm:$0xff]  ;;  %v2503_v36 = vpack.c.bf16 %v360_v30, %v356_v28  ;;  %v400_v27 = vld [vmem:[#allocation5 + $0x870] sm:$0xff]  ;;  %v403_v28 = vld [vmem:[#allocation5 + $0x888] sm:$0xff] }
  0xdf   :  { %v405_v30 = vld [vmem:[#allocation5 + $0x898] sm:$0xff]  ;;  %v439_v16 = vld [vmem:[#allocation5 + $0x9a8] sm:$0xff] }
  0xe0   :  { %2260 = vmatpush1.bf16.msra.mxu0 %v2259_v39  ;;  %v366_v39 = vld [vmem:[#allocation5 + $0x760] sm:$0xff] }
  0xe1   :  { %2484 = vmatpush1.bf16.msra.mxu1 %v2483_v40  ;;  %2262 = vmatprep.subr.bf16.mxu0 %v2261_v41  ;;  %v364_v40 = vld [vmem:[#allocation5 + $0x750] sm:$0xff]  ;;  %v2505_v41 = vpack.c.bf16 %v369_v34, %v365_v33  ;;  %v2283_v47 = vpack.c.bf16 %v366_v39, %v362_v38  ;;  %v125_v34 = vld [vmem:[#allocation2 + $0x48] sm:$0xff]  ;;  %v406_v38 = vld [vmem:[#allocation5 + $0x8a0] sm:$0xff] }
  0xe2   :  { %2486 = vmatprep.subr.bf16.mxu1 %v2485_v45  ;;  %v373_v45 = vld [vmem:[#allocation5 + $0x798] sm:$0xff]  ;;  %v2507_v48 = vpack.c.bf16 %v368_v42, %v364_v40  ;;  %v404_v39 = vld [vmem:[#allocation5 + $0x890] sm:$0xff]  ;;  %v2525_v40 = vpack.c.bf16 %v409_v31, %v405_v30  ;;  %v411_v42 = vld [vmem:[#allocation5 + $0x8c8] sm:$0xff] }
  0xe3   :  { %v449_v30 = vld [vmem:[#allocation5 + $0x9f8] sm:$0xff] }
  0xe4   :  { %2264 = vmatpush1.bf16.msra.mxu0 %v2263_v51  ;;  %v374_v51 = vld [vmem:[#allocation5 + $0x7a0] sm:$0xff] }
  0xe5   :  { %2488 = vmatpush1.bf16.msra.mxu1 %v2487_v52  ;;  %2266 = vmatprep.subr.bf16.mxu0 %v2265_v53  ;;  %v372_v52 = vld [vmem:[#allocation5 + $0x790] sm:$0xff]  ;;  %v2509_v53 = vpack.c.bf16 %v377_v46, %v373_v45  ;;  %v2287_v59 = vpack.c.bf16 %v374_v51, %v370_v50  ;;  %v417_v45 = vld [vmem:[#allocation5 + $0x8f8] sm:$0xff]  ;;  %v410_v50 = vld [vmem:[#allocation5 + $0x8c0] sm:$0xff] }
  0xe6   :  { %2490 = vmatprep.subr.bf16.mxu1 %v2489_v57  ;;  %v381_v57 = vld [vmem:[#allocation5 + $0x7d8] sm:$0xff]  ;;  %v2511_v60 = vpack.c.bf16 %v376_v54, %v372_v52  ;;  %v414_v51 = vld [vmem:[#allocation5 + $0x8e0] sm:$0xff]  ;;  %v412_v52 = vld [vmem:[#allocation5 + $0x8d0] sm:$0xff] }
  0xe7   :  { %v121_v46 = vld [vmem:[#allocation2 + $0x28] sm:$0xff]  ;;  %v416_v54 = vld [vmem:[#allocation5 + $0x8f0] sm:$0xff] }
  0xe8   :  { %2268 = vmatpush1.bf16.msra.mxu0 %v2267_v63  ;;  %v382_v63 = vld [vmem:[#allocation5 + $0x7e0] sm:$0xff] }
  0xe9   :  { %2492 = vmatpush1.bf16.msra.mxu1 %v2491_v0  ;;  %2270 = vmatprep.subr.bf16.mxu0 %v2269_v1  ;;  %v380_v0 = vld [vmem:[#allocation5 + $0x7d0] sm:$0xff]  ;;  %v2513_v1 = vpack.c.bf16 %v385_v58, %v381_v57  ;;  %v2291_v7 = vpack.c.bf16 %v382_v63, %v378_v62  ;;  %v421_v57 = vld [vmem:[#allocation5 + $0x918] sm:$0xff]  ;;  %v418_v62 = vld [vmem:[#allocation5 + $0x900] sm:$0xff] }
  0xea   :  { %2494 = vmatprep.subr.bf16.mxu1 %v2493_v5  ;;  %v389_v5 = vld [vmem:[#allocation5 + $0x818] sm:$0xff]  ;;  %v2515_v8 = vpack.c.bf16 %v384_v2, %v380_v0  ;;  %v422_v63 = vld [vmem:[#allocation5 + $0x920] sm:$0xff]  ;;  %v420_v0 = vld [vmem:[#allocation5 + $0x910] sm:$0xff] }
  0xeb   :  { %v425_v58 = vld [vmem:[#allocation5 + $0x938] sm:$0xff]  ;;  %v424_v2 = vld [vmem:[#allocation5 + $0x930] sm:$0xff] }
  0xec   :  { %2272 = vmatpush1.bf16.msra.mxu0 %v2271_v11  ;;  %v390_v11 = vld [vmem:[#allocation5 + $0x820] sm:$0xff] }
  0xed   :  { %2496 = vmatpush1.bf16.msra.mxu1 %v2495_v12  ;;  %2274 = vmatprep.subr.bf16.mxu0 %v2273_v13  ;;  %v388_v12 = vld [vmem:[#allocation5 + $0x810] sm:$0xff]  ;;  %v2517_v13 = vpack.c.bf16 %v393_v6, %v389_v5  ;;  %v2295_v20 = vpack.c.bf16 %v390_v11, %v386_v10  ;;  %v429_v5 = vld [vmem:[#allocation5 + $0x958] sm:$0xff]  ;;  %v426_v10 = vld [vmem:[#allocation5 + $0x940] sm:$0xff] }
  0xee   :  { %2498 = vmatprep.subr.bf16.mxu1 %v2497_v17  ;;  %v397_v17 = vld [vmem:[#allocation5 + $0x858] sm:$0xff]  ;;  %v2519_v21 = vpack.c.bf16 %v392_v14, %v388_v12  ;;  %v430_v11 = vld [vmem:[#allocation5 + $0x960] sm:$0xff]  ;;  %v428_v12 = vld [vmem:[#allocation5 + $0x950] sm:$0xff] }
  0xef   :  { %v2521_v26 = vpack.c.bf16 %v401_v18, %v397_v17  ;;  %v433_v6 = vld [vmem:[#allocation5 + $0x978] sm:$0xff]  ;;  %v432_v14 = vld [vmem:[#allocation5 + $0x970] sm:$0xff] }
  0xf0   :  { %2276 = vmatpush1.bf16.msra.mxu0 %v2275_v23  ;;  %v394_v23 = vld [vmem:[#allocation5 + $0x840] sm:$0xff]  ;;  %v437_v17 = vld [vmem:[#allocation5 + $0x998] sm:$0xff] }
  0xf1   :  { %2500 = vmatpush1.bf16.msra.mxu1 %v2499_v24  ;;  %2278 = vmatprep.subr.bf16.mxu0 %v2277_v25  ;;  %v398_v24 = vld [vmem:[#allocation5 + $0x860] sm:$0xff]  ;;  %v396_v25 = vld [vmem:[#allocation5 + $0x850] sm:$0xff]  ;;  %v441_v18 = vld [vmem:[#allocation5 + $0x9b8] sm:$0xff] }
  0xf2   :  { %2502 = vmatprep.subr.bf16.mxu1 %v2501_v29  ;;  %v407_v29 = vld [vmem:[#allocation5 + $0x8a8] sm:$0xff]  ;;  %v2299_v33 = vpack.c.bf16 %v398_v24, %v394_v23  ;;  %v438_v23 = vld [vmem:[#allocation5 + $0x9a0] sm:$0xff]  ;;  %v436_v24 = vld [vmem:[#allocation5 + $0x990] sm:$0xff] }
  0xf4   :  { %2280 = vmatpush1.bf16.msra.mxu0 %v2279_v35  ;;  %v2523_v35 = vpack.c.bf16 %v400_v27, %v396_v25  ;;  %v2541_v25 = vpack.c.bf16 %v441_v18, %v437_v17  ;;  %v443_v27 = vld [vmem:[#allocation5 + $0x9c8] sm:$0xff]  ;;  %v474_v18 = vld [vmem:[#allocation5 + $0xac0] sm:$0xff] }
  0xf5   :  { %2504 = vmatpush1.bf16.msra.mxu1 %v2503_v36  ;;  %2282 = vmatprep.subr.bf16.mxu0 %v2281_v37  ;;  %v2301_v36 = vpack.c.bf16 %v407_v29, %v403_v28  ;;  %v402_v37 = vld [vmem:[#allocation5 + $0x880] sm:$0xff]  ;;  %v447_v28 = vld [vmem:[#allocation5 + $0x9e8] sm:$0xff]  ;;  %v445_v29 = vld [vmem:[#allocation5 + $0x9d8] sm:$0xff] }
  0xf6   :  { %2506 = vmatprep.subr.bf16.mxu1 %v2505_v41  ;;  %v408_v41 = vld [vmem:[#allocation5 + $0x8b0] sm:$0xff] }
  0xf8   :  { %2284 = vmatpush1.bf16.msra.mxu0 %v2283_v47  ;;  %v2303_v47 = vpack.c.bf16 %v406_v38, %v402_v37  ;;  %v2545_v37 = vpack.c.bf16 %v449_v30, %v445_v29  ;;  %v448_v38 = vld [vmem:[#allocation5 + $0x9f0] sm:$0xff]  ;;  %v482_v30 = vld [vmem:[#allocation5 + $0xb00] sm:$0xff] }
  0xf9   :  { %2508 = vmatpush1.bf16.msra.mxu1 %v2507_v48  ;;  %2286 = vmatprep.subr.bf16.mxu0 %v2285_v49  ;;  %v2527_v48 = vpack.c.bf16 %v408_v41, %v404_v39  ;;  %v2305_v49 = vpack.c.bf16 %v415_v43, %v411_v42  ;;  %v451_v39 = vld [vmem:[#allocation5 + $0xa08] sm:$0xff]  ;;  %v453_v41 = vld [vmem:[#allocation5 + $0xa18] sm:$0xff] }
  0xfa   :  { %2510 = vmatprep.subr.bf16.mxu1 %v2509_v53  ;;  %v2529_v53 = vpack.c.bf16 %v417_v45, %v413_v44  ;;  %v457_v42 = vld [vmem:[#allocation5 + $0xa38] sm:$0xff] }
  0xfc   :  { %2288 = vmatpush1.bf16.msra.mxu0 %v2287_v59  ;;  %v2307_v59 = vpack.c.bf16 %v414_v51, %v410_v50  ;;  %v456_v50 = vld [vmem:[#allocation5 + $0xa30] sm:$0xff]  ;;  %v459_v51 = vld [vmem:[#allocation5 + $0xa48] sm:$0xff] }
  0xfd   :  { %2512 = vmatpush1.bf16.msra.mxu1 %v2511_v60  ;;  %2290 = vmatprep.subr.bf16.mxu0 %v2289_v61  ;;  %v2531_v60 = vpack.c.bf16 %v416_v54, %v412_v52  ;;  %v2309_v61 = vpack.c.bf16 %v423_v56, %v419_v55  ;;  %v463_v52 = vld [vmem:[#allocation5 + $0xa68] sm:$0xff]  ;;  %v465_v54 = vld [vmem:[#allocation5 + $0xa78] sm:$0xff] }
  0xfe   :  { %2514 = vmatprep.subr.bf16.mxu1 %v2513_v1  ;;  %v2533_v1 = vpack.c.bf16 %v425_v58, %v421_v57  ;;  %v2329_v57 = vpack.c.bf16 %v463_v52, %v459_v51  ;;  %v458_v58 = vld [vmem:[#allocation5 + $0xa40] sm:$0xff] }
 0x100   :  { %2292 = vmatpush1.bf16.msra.mxu0 %v2291_v7  ;;  %v2311_v7 = vpack.c.bf16 %v422_v63, %v418_v62  ;;  %v464_v62 = vld [vmem:[#allocation5 + $0xa70] sm:$0xff]  ;;  %v467_v63 = vld [vmem:[#allocation5 + $0xa88] sm:$0xff] }
 0x101   :  { %2516 = vmatpush1.bf16.msra.mxu1 %v2515_v8  ;;  %2294 = vmatprep.subr.bf16.mxu0 %v2293_v9  ;;  %v2535_v8 = vpack.c.bf16 %v424_v2, %v420_v0  ;;  %v2313_v9 = vpack.c.bf16 %v431_v4, %v427_v3  ;;  %v471_v0 = vld [vmem:[#allocation5 + $0xaa8] sm:$0xff]  ;;  %v473_v2 = vld [vmem:[#allocation5 + $0xab8] sm:$0xff] }
 0x102   :  { %2518 = vmatprep.subr.bf16.mxu1 %v2517_v13  ;;  %v2537_v13 = vpack.c.bf16 %v433_v6, %v429_v5  ;;  %v2333_v5 = vpack.c.bf16 %v471_v0, %v467_v63  ;;  %v466_v6 = vld [vmem:[#allocation5 + $0xa80] sm:$0xff] }
 0x103   :  { %742 = vmatmul.mubr.f32.vlgmr.msra.gmra.mrb[0].mxu0 %v118_v19 }
 0x104   :  { %2296 = vmatpush1.bf16.msra.mxu0 %v2295_v20  ;;  %1050 = vmatmul.mubr.f32.vlgmr.msra.gmra.mrb[0].mxu1 %v118_v19  ;;  %v2315_v19 = vpack.c.bf16 %v430_v11, %v426_v10  ;;  %v2539_v20 = vpack.c.bf16 %v432_v14, %v428_v12  ;;  %v472_v10 = vld [vmem:[#allocation5 + $0xab0] sm:$0xff]  ;;  %v475_v11 = vld [vmem:[#allocation5 + $0xac8] sm:$0xff]  ;;  %v481_v14 = vld [vmem:[#allocation5 + $0xaf8] sm:$0xff] }
 0x105   :  { %2520 = vmatpush1.bf16.msra.mxu1 %v2519_v21  ;;  %2298 = vmatprep.subr.bf16.mxu0 %v2297_v22  ;;  %v2317_v21 = vpack.c.bf16 %v439_v16, %v435_v15  ;;  %v434_v22 = vld [vmem:[#allocation5 + $0x980] sm:$0xff]  ;;  %v479_v12 = vld [vmem:[#allocation5 + $0xae8] sm:$0xff] }
 0x106   :  { %2522 = vmatprep.subr.bf16.mxu1 %v2521_v26  ;;  %747 = vmatprep.mubr.f32.mxu0 %v126_v32  ;;  %v440_v26 = vld [vmem:[#allocation5 + $0x9b0] sm:$0xff]  ;;  %v2319_v31 = vpack.c.bf16 %v438_v23, %v434_v22  ;;  %v2337_v17 = vpack.c.bf16 %v479_v12, %v475_v11  ;;  %v483_v23 = vld [vmem:[#allocation5 + $0xb08] sm:$0xff] }
 0x107   :  { %1055 = vmatprep.mubr.f32.mxu1 %v126_v32  ;;  %748 = vmatmul.mubr.f32.gmra.mrb[2].mxu0 %v125_v34  ;;  %v2543_v32 = vpack.c.bf16 %v440_v26, %v436_v24  ;;  %v480_v22 = vld [vmem:[#allocation5 + $0xaf0] sm:$0xff]  ;;  %v487_v24 = vld [vmem:[#allocation5 + $0xb28] sm:$0xff]  ;;  %v489_v26 = vld [vmem:[#allocation5 + $0xb38] sm:$0xff] }
 0x108   :  { %2300 = vmatpush1.bf16.msra.mxu0 %v2299_v33  ;;  %1056 = vmatmul.mubr.f32.gmra.mrb[2].mxu1 %v125_v34  ;;  %v2321_v33 = vpack.c.bf16 %v447_v28, %v443_v27  ;;  %v442_v34 = vld [vmem:[#allocation5 + $0x9c0] sm:$0xff]  ;;  %v2341_v29 = vpack.c.bf16 %v487_v24, %v483_v23  ;;  %v120_v23 = vld [vmem:[#allocation2 + $0x20] sm:$0xff] }
 0x109   :  { %2524 = vmatpush1.bf16.msra.mxu1 %v2523_v35  ;;  %2302 = vmatprep.subr.bf16.mxu0 %v2301_v36  ;;  %v446_v35 = vld [vmem:[#allocation5 + $0x9e0] sm:$0xff]  ;;  %v444_v36 = vld [vmem:[#allocation5 + $0x9d0] sm:$0xff] }
 0x10a   :  { %2526 = vmatprep.subr.bf16.mxu1 %v2525_v40  ;;  %818 = vmatprep.mubr.f32.mxu0 %v121_v46  ;;  %v455_v40 = vld [vmem:[#allocation5 + $0xa28] sm:$0xff]  ;;  %v2323_v43 = vpack.c.bf16 %v446_v35, %v442_v34  ;;  %v2547_v44 = vpack.c.bf16 %v448_v38, %v444_v36  ;;  %v488_v34 = vld [vmem:[#allocation5 + $0xb30] sm:$0xff]  ;;  %v497_v38 = vld [vmem:[#allocation5 + $0xb78] sm:$0xff] }
 0x10b   :  { %1126 = vmatprep.mubr.f32.mxu1 %v121_v46  ;;  %v2325_v45 = vpack.c.bf16 %v455_v40, %v451_v39  ;;  %v450_v46 = vld [vmem:[#allocation5 + $0xa00] sm:$0xff]  ;;  %v491_v35 = vld [vmem:[#allocation5 + $0xb48] sm:$0xff] }
 0x10c   :  { %2304 = vmatpush1.bf16.msra.mxu0 %v2303_v47  ;;  %v454_v47 = vld [vmem:[#allocation5 + $0xa20] sm:$0xff]  ;;  %v495_v36 = vld [vmem:[#allocation5 + $0xb68] sm:$0xff] }
 0x10d   :  { %2528 = vmatpush1.bf16.msra.mxu1 %v2527_v48  ;;  %2306 = vmatprep.subr.bf16.mxu0 %v2305_v49  ;;  %v452_v48 = vld [vmem:[#allocation5 + $0xa10] sm:$0xff]  ;;  %v2549_v49 = vpack.c.bf16 %v457_v42, %v453_v41  ;;  %v2327_v55 = vpack.c.bf16 %v454_v47, %v450_v46  ;;  %v2345_v41 = vpack.c.bf16 %v495_v36, %v491_v35  ;;  %v490_v42 = vld [vmem:[#allocation5 + $0xb40] sm:$0xff]  ;;  %v499_v47 = vld [vmem:[#allocation5 + $0xb88] sm:$0xff] }
 0x10e   :  { %2530 = vmatprep.subr.bf16.mxu1 %v2529_v53  ;;  %v461_v53 = vld [vmem:[#allocation5 + $0xa58] sm:$0xff]  ;;  %v2551_v56 = vpack.c.bf16 %v456_v50, %v452_v48  ;;  %v496_v46 = vld [vmem:[#allocation5 + $0xb70] sm:$0xff]  ;;  %v503_v48 = vld [vmem:[#allocation5 + $0xba8] sm:$0xff] }
 0x10f   :  { %v505_v50 = vld [vmem:[#allocation5 + $0xbb8] sm:$0xff]  ;;  %v128_v36 = vld [vmem:[#allocation2 + $0x60] sm:$0xff] }
 0x110   :  { %2308 = vmatpush1.bf16.msra.mxu0 %v2307_v59  ;;  %v462_v59 = vld [vmem:[#allocation5 + $0xa60] sm:$0xff]  ;;  %v537_v35 = vld [vmem:[#allocation5 + $0xcb8] sm:$0xff] }
 0x111   :  { %2532 = vmatpush1.bf16.msra.mxu1 %v2531_v60  ;;  %2310 = vmatprep.subr.bf16.mxu0 %v2309_v61  ;;  %v460_v60 = vld [vmem:[#allocation5 + $0xa50] sm:$0xff]  ;;  %v2553_v61 = vpack.c.bf16 %v465_v54, %v461_v53  ;;  %v2331_v3 = vpack.c.bf16 %v462_v59, %v458_v58  ;;  %v2349_v53 = vpack.c.bf16 %v503_v48, %v499_v47  ;;  %v498_v54 = vld [vmem:[#allocation5 + $0xb80] sm:$0xff]  ;;  %v507_v59 = vld [vmem:[#allocation5 + $0xbc8] sm:$0xff] }
 0x112   :  { %2534 = vmatprep.subr.bf16.mxu1 %v2533_v1  ;;  %v469_v1 = vld [vmem:[#allocation5 + $0xa98] sm:$0xff]  ;;  %v2555_v4 = vpack.c.bf16 %v464_v62, %v460_v60  ;;  %v504_v58 = vld [vmem:[#allocation5 + $0xbb0] sm:$0xff]  ;;  %v511_v60 = vld [vmem:[#allocation5 + $0xbe8] sm:$0xff] }
 0x113   :  { %v513_v62 = vld [vmem:[#allocation5 + $0xbf8] sm:$0xff]  ;;  %v543_v47 = vld [vmem:[#allocation5 + $0xce8] sm:$0xff] }
 0x114   :  { %2312 = vmatpush1.bf16.msra.mxu0 %v2311_v7  ;;  %v470_v7 = vld [vmem:[#allocation5 + $0xaa0] sm:$0xff]  ;;  %v541_v48 = vld [vmem:[#allocation5 + $0xcd8] sm:$0xff] }
 0x115   :  { %2536 = vmatpush1.bf16.msra.mxu1 %v2535_v8  ;;  %2314 = vmatprep.subr.bf16.mxu0 %v2313_v9  ;;  %v468_v8 = vld [vmem:[#allocation5 + $0xa90] sm:$0xff]  ;;  %v2557_v9 = vpack.c.bf16 %v473_v2, %v469_v1  ;;  %v2335_v15 = vpack.c.bf16 %v470_v7, %v466_v6  ;;  %v2353_v1 = vpack.c.bf16 %v511_v60, %v507_v59  ;;  %v506_v2 = vld [vmem:[#allocation5 + $0xbc0] sm:$0xff]  ;;  %v515_v7 = vld [vmem:[#allocation5 + $0xc08] sm:$0xff]  ;;  %v3235_v60 = vmov 0.0  }
 0x116   :  { %2538 = vmatprep.subr.bf16.mxu1 %v2537_v13  ;;  %v477_v13 = vld [vmem:[#allocation5 + $0xad8] sm:$0xff]  ;;  %v2559_v16 = vpack.c.bf16 %v472_v10, %v468_v8  ;;  %v512_v6 = vld [vmem:[#allocation5 + $0xbf0] sm:$0xff]  ;;  %v519_v8 = vld [vmem:[#allocation5 + $0xc28] sm:$0xff] }
 0x117   :  { %v521_v10 = vld [vmem:[#allocation5 + $0xc38] sm:$0xff]  ;;  %v551_v59 = vld [vmem:[#allocation5 + $0xd28] sm:$0xff] }
 0x118   :  { %2316 = vmatpush1.bf16.msra.mxu0 %v2315_v19  ;;  %v478_v19 = vld [vmem:[#allocation5 + $0xae0] sm:$0xff] }
 0x119   :  { %2540 = vmatpush1.bf16.msra.mxu1 %v2539_v20  ;;  %2318 = vmatprep.subr.bf16.mxu0 %v2317_v21  ;;  %v476_v20 = vld [vmem:[#allocation5 + $0xad0] sm:$0xff]  ;;  %v2561_v21 = vpack.c.bf16 %v481_v14, %v477_v13  ;;  %v2339_v27 = vpack.c.bf16 %v478_v19, %v474_v18  ;;  %v2357_v13 = vpack.c.bf16 %v519_v8, %v515_v7  ;;  %v514_v14 = vld [vmem:[#allocation5 + $0xc00] sm:$0xff]  ;;  %v523_v19 = vld [vmem:[#allocation5 + $0xc48] sm:$0xff] }
 0x11a   :  { %2542 = vmatprep.subr.bf16.mxu1 %v2541_v25  ;;  %v485_v25 = vld [vmem:[#allocation5 + $0xb18] sm:$0xff]  ;;  %v2563_v28 = vpack.c.bf16 %v480_v22, %v476_v20  ;;  %v520_v18 = vld [vmem:[#allocation5 + $0xc30] sm:$0xff]  ;;  %v527_v20 = vld [vmem:[#allocation5 + $0xc68] sm:$0xff] }
 0x11b   :  { %v529_v22 = vld [vmem:[#allocation5 + $0xc78] sm:$0xff]  ;;  %v555_v7 = vld [vmem:[#allocation5 + $0xd48] sm:$0xff] }
 0x11c   :  { %2320 = vmatpush1.bf16.msra.mxu0 %v2319_v31  ;;  %v486_v31 = vld [vmem:[#allocation5 + $0xb20] sm:$0xff]  ;;  %v559_v8 = vld [vmem:[#allocation5 + $0xd68] sm:$0xff] }
 0x11d   :  { %2544 = vmatpush1.bf16.msra.mxu1 %v2543_v32  ;;  %2322 = vmatprep.subr.bf16.mxu0 %v2321_v33  ;;  %v484_v32 = vld [vmem:[#allocation5 + $0xb10] sm:$0xff]  ;;  %v2565_v33 = vpack.c.bf16 %v489_v26, %v485_v25  ;;  %v2343_v39 = vpack.c.bf16 %v486_v31, %v482_v30  ;;  %v2361_v26 = vpack.c.bf16 %v527_v20, %v523_v19  ;;  %v563_v19 = vld [vmem:[#allocation5 + $0xd88] sm:$0xff] }
 0x11e   :  { %2546 = vmatprep.subr.bf16.mxu1 %v2545_v37  ;;  %v493_v37 = vld [vmem:[#allocation5 + $0xb58] sm:$0xff]  ;;  %v2567_v40 = vpack.c.bf16 %v488_v34, %v484_v32  ;;  %v528_v31 = vld [vmem:[#allocation5 + $0xc70] sm:$0xff]  ;;  %v531_v32 = vld [vmem:[#allocation5 + $0xc88] sm:$0xff] }
 0x11f   :  { %v533_v34 = vld [vmem:[#allocation5 + $0xc98] sm:$0xff]  ;;  %v567_v20 = vld [vmem:[#allocation5 + $0xda8] sm:$0xff] }
 0x120   :  { %2324 = vmatpush1.bf16.msra.mxu0 %v2323_v43  ;;  %v494_v43 = vld [vmem:[#allocation5 + $0xb60] sm:$0xff] }
 0x121   :  { %2548 = vmatpush1.bf16.msra.mxu1 %v2547_v44  ;;  %2326 = vmatprep.subr.bf16.mxu0 %v2325_v45  ;;  %v492_v44 = vld [vmem:[#allocation5 + $0xb50] sm:$0xff]  ;;  %v2569_v45 = vpack.c.bf16 %v497_v38, %v493_v37  ;;  %v2347_v51 = vpack.c.bf16 %v494_v43, %v490_v42  ;;  %v127_v38 = vld [vmem:[#allocation2 + $0x58] sm:$0xff]  ;;  %v534_v42 = vld [vmem:[#allocation5 + $0xca0] sm:$0xff] }
 0x122   :  { %2550 = vmatprep.subr.bf16.mxu1 %v2549_v49  ;;  %v501_v49 = vld [vmem:[#allocation5 + $0xb98] sm:$0xff]  ;;  %v2571_v52 = vpack.c.bf16 %v496_v46, %v492_v44  ;;  %v532_v43 = vld [vmem:[#allocation5 + $0xc90] sm:$0xff]  ;;  %v2589_v44 = vpack.c.bf16 %v537_v35, %v533_v34  ;;  %v539_v46 = vld [vmem:[#allocation5 + $0xcc8] sm:$0xff] }
 0x123   :  { %v577_v34 = vld [vmem:[#allocation5 + $0xdf8] sm:$0xff] }
 0x124   :  { %2328 = vmatpush1.bf16.msra.mxu0 %v2327_v55  ;;  %v502_v55 = vld [vmem:[#allocation5 + $0xba0] sm:$0xff] }
 0x125   :  { %2552 = vmatpush1.bf16.msra.mxu1 %v2551_v56  ;;  %2330 = vmatprep.subr.bf16.mxu0 %v2329_v57  ;;  %v500_v56 = vld [vmem:[#allocation5 + $0xb90] sm:$0xff]  ;;  %v2573_v57 = vpack.c.bf16 %v505_v50, %v501_v49  ;;  %v2351_v63 = vpack.c.bf16 %v502_v55, %v498_v54  ;;  %v545_v49 = vld [vmem:[#allocation5 + $0xcf8] sm:$0xff]  ;;  %v542_v54 = vld [vmem:[#allocation5 + $0xce0] sm:$0xff] }
 0x126   :  { %2554 = vmatprep.subr.bf16.mxu1 %v2553_v61  ;;  %v509_v61 = vld [vmem:[#allocation5 + $0xbd8] sm:$0xff]  ;;  %v2575_v0 = vpack.c.bf16 %v504_v58, %v500_v56  ;;  %v540_v55 = vld [vmem:[#allocation5 + $0xcd0] sm:$0xff]  ;;  %v2593_v56 = vpack.c.bf16 %v545_v49, %v541_v48  ;;  %v547_v58 = vld [vmem:[#allocation5 + $0xd08] sm:$0xff] }
 0x128   :  { %2332 = vmatpush1.bf16.msra.mxu0 %v2331_v3  ;;  %v510_v3 = vld [vmem:[#allocation5 + $0xbe0] sm:$0xff] }
 0x129   :  { %2556 = vmatpush1.bf16.msra.mxu1 %v2555_v4  ;;  %2334 = vmatprep.subr.bf16.mxu0 %v2333_v5  ;;  %v508_v4 = vld [vmem:[#allocation5 + $0xbd0] sm:$0xff]  ;;  %v2577_v5 = vpack.c.bf16 %v513_v62, %v509_v61  ;;  %v2355_v11 = vpack.c.bf16 %v510_v3, %v506_v2  ;;  %v549_v61 = vld [vmem:[#allocation5 + $0xd18] sm:$0xff]  ;;  %v546_v2 = vld [vmem:[#allocation5 + $0xd00] sm:$0xff] }
 0x12a   :  { %2558 = vmatprep.subr.bf16.mxu1 %v2557_v9  ;;  %v517_v9 = vld [vmem:[#allocation5 + $0xc18] sm:$0xff]  ;;  %v2579_v12 = vpack.c.bf16 %v512_v6, %v508_v4  ;;  %v550_v3 = vld [vmem:[#allocation5 + $0xd20] sm:$0xff]  ;;  %v548_v4 = vld [vmem:[#allocation5 + $0xd10] sm:$0xff] }
 0x12b   :  { %v553_v62 = vld [vmem:[#allocation5 + $0xd38] sm:$0xff]  ;;  %v552_v6 = vld [vmem:[#allocation5 + $0xd30] sm:$0xff] }
 0x12c   :  { %2336 = vmatpush1.bf16.msra.mxu0 %v2335_v15  ;;  %v518_v15 = vld [vmem:[#allocation5 + $0xc20] sm:$0xff] }
 0x12d   :  { %2560 = vmatpush1.bf16.msra.mxu1 %v2559_v16  ;;  %2338 = vmatprep.subr.bf16.mxu0 %v2337_v17  ;;  %v516_v16 = vld [vmem:[#allocation5 + $0xc10] sm:$0xff]  ;;  %v2581_v17 = vpack.c.bf16 %v521_v10, %v517_v9  ;;  %v2359_v24 = vpack.c.bf16 %v518_v15, %v514_v14  ;;  %v557_v9 = vld [vmem:[#allocation5 + $0xd58] sm:$0xff]  ;;  %v554_v14 = vld [vmem:[#allocation5 + $0xd40] sm:$0xff] }
 0x12e   :  { %2562 = vmatprep.subr.bf16.mxu1 %v2561_v21  ;;  %v525_v21 = vld [vmem:[#allocation5 + $0xc58] sm:$0xff]  ;;  %v2583_v25 = vpack.c.bf16 %v520_v18, %v516_v16  ;;  %v558_v15 = vld [vmem:[#allocation5 + $0xd60] sm:$0xff]  ;;  %v556_v16 = vld [vmem:[#allocation5 + $0xd50] sm:$0xff] }
 0x12f   :  { %v2585_v30 = vpack.c.bf16 %v529_v22, %v525_v21  ;;  %v561_v10 = vld [vmem:[#allocation5 + $0xd78] sm:$0xff]  ;;  %v560_v18 = vld [vmem:[#allocation5 + $0xd70] sm:$0xff] }
 0x130   :  { %2340 = vmatpush1.bf16.msra.mxu0 %v2339_v27  ;;  %v522_v27 = vld [vmem:[#allocation5 + $0xc40] sm:$0xff]  ;;  %v565_v21 = vld [vmem:[#allocation5 + $0xd98] sm:$0xff] }
 0x131   :  { %2564 = vmatpush1.bf16.msra.mxu1 %v2563_v28  ;;  %2342 = vmatprep.subr.bf16.mxu0 %v2341_v29  ;;  %v526_v28 = vld [vmem:[#allocation5 + $0xc60] sm:$0xff]  ;;  %v524_v29 = vld [vmem:[#allocation5 + $0xc50] sm:$0xff]  ;;  %v569_v22 = vld [vmem:[#allocation5 + $0xdb8] sm:$0xff] }
 0x132   :  { %2566 = vmatprep.subr.bf16.mxu1 %v2565_v33  ;;  %v535_v33 = vld [vmem:[#allocation5 + $0xca8] sm:$0xff]  ;;  %v2363_v37 = vpack.c.bf16 %v526_v28, %v522_v27  ;;  %v566_v27 = vld [vmem:[#allocation5 + $0xda0] sm:$0xff]  ;;  %v564_v28 = vld [vmem:[#allocation5 + $0xd90] sm:$0xff] }
 0x134   :  { %2344 = vmatpush1.bf16.msra.mxu0 %v2343_v39  ;;  %v2587_v39 = vpack.c.bf16 %v528_v31, %v524_v29  ;;  %v2605_v29 = vpack.c.bf16 %v569_v22, %v565_v21  ;;  %v571_v31 = vld [vmem:[#allocation5 + $0xdc8] sm:$0xff]  ;;  %v1255_v21 = vld [vmem:[#allocation8 + $0xf8] sm:$0xff] }
 0x135   :  { %2568 = vmatpush1.bf16.msra.mxu1 %v2567_v40  ;;  %2346 = vmatprep.subr.bf16.mxu0 %v2345_v41  ;;  %v2365_v40 = vpack.c.bf16 %v535_v33, %v531_v32  ;;  %v530_v41 = vld [vmem:[#allocation5 + $0xc80] sm:$0xff]  ;;  %v575_v32 = vld [vmem:[#allocation5 + $0xde8] sm:$0xff]  ;;  %v573_v33 = vld [vmem:[#allocation5 + $0xdd8] sm:$0xff] }
 0x136   :  { %2570 = vmatprep.subr.bf16.mxu1 %v2569_v45  ;;  %v536_v45 = vld [vmem:[#allocation5 + $0xcb0] sm:$0xff]  ;;  %v2367_v50 = vpack.c.bf16 %v534_v42, %v530_v41  ;;  %v2609_v41 = vpack.c.bf16 %v577_v34, %v573_v33 }
 0x137   :  { %v576_v42 = vld [vmem:[#allocation5 + $0xdf0] sm:$0xff] }
 0x138   :  { %2348 = vmatpush1.bf16.msra.mxu0 %v2347_v51  ;;  %v2591_v51 = vpack.c.bf16 %v536_v45, %v532_v43  ;;  %v1225_v43 = vld [vmem:[#allocation8 + $0x8] sm:$0xff]  ;;  %v1227_v45 = vld [vmem:[#allocation8 + $0x18] sm:$0xff] }
 0x139   :  { %2572 = vmatpush1.bf16.msra.mxu1 %v2571_v52  ;;  %2350 = vmatprep.subr.bf16.mxu0 %v2349_v53  ;;  %v2369_v52 = vpack.c.bf16 %v543_v47, %v539_v46  ;;  %v538_v53 = vld [vmem:[#allocation5 + $0xcc0] sm:$0xff] }
 0x13a   :  { %2574 = vmatprep.subr.bf16.mxu1 %v2573_v57  ;;  %v544_v57 = vld [vmem:[#allocation5 + $0xcf0] sm:$0xff]  ;;  %v1231_v46 = vld [vmem:[#allocation8 + $0x38] sm:$0xff] }
 0x13c   :  { %2352 = vmatpush1.bf16.msra.mxu0 %v2351_v63  ;;  %v2371_v63 = vpack.c.bf16 %v542_v54, %v538_v53  ;;  %v1226_v53 = vld [vmem:[#allocation8 + $0x10] sm:$0xff] }
 0x13d   :  { %2576 = vmatpush1.bf16.msra.mxu1 %v2575_v0  ;;  %2354 = vmatprep.subr.bf16.mxu0 %v2353_v1  ;;  %v2595_v0 = vpack.c.bf16 %v544_v57, %v540_v55  ;;  %v2373_v1 = vpack.c.bf16 %v551_v59, %v547_v58  ;;  %v1230_v54 = vld [vmem:[#allocation8 + $0x30] sm:$0xff]  ;;  %v1233_v55 = vld [vmem:[#allocation8 + $0x48] sm:$0xff]  ;;  %v122_v57 = vld [vmem:[#allocation2 + $0x30] sm:$0xff] }
 0x13e   :  { %2578 = vmatprep.subr.bf16.mxu1 %v2577_v5  ;;  %v2597_v5 = vpack.c.bf16 %v553_v62, %v549_v61  ;;  %v1235_v58 = vld [vmem:[#allocation8 + $0x58] sm:$0xff]  ;;  %v2743_v62 = vpack.c.bf16 %v1230_v54, %v1226_v53  ;;  %v1273_v53 = vld [vmem:[#allocation8 + $0x188] sm:$0xff] }
 0x13f   :  { %v1239_v59 = vld [vmem:[#allocation8 + $0x78] sm:$0xff]  ;;  %v1277_v54 = vld [vmem:[#allocation8 + $0x1a8] sm:$0xff] }
 0x140   :  { %2356 = vmatpush1.bf16.msra.mxu0 %v2355_v11  ;;  %v2375_v11 = vpack.c.bf16 %v550_v3, %v546_v2  ;;  %v1234_v2 = vld [vmem:[#allocation8 + $0x50] sm:$0xff]  ;;  %v2745_v3 = vpack.c.bf16 %v1239_v59, %v1235_v58  ;;  %v2637_v59 = vpack.c.bf16 %v1277_v54, %v1273_v53 }
 0x141   :  { %2580 = vmatpush1.bf16.msra.mxu1 %v2579_v12  ;;  %2358 = vmatprep.subr.bf16.mxu0 %v2357_v13  ;;  %v2599_v12 = vpack.c.bf16 %v552_v6, %v548_v4  ;;  %v2377_v13 = vpack.c.bf16 %v559_v8, %v555_v7  ;;  %v1238_v4 = vld [vmem:[#allocation8 + $0x70] sm:$0xff]  ;;  %v1245_v6 = vld [vmem:[#allocation8 + $0xa8] sm:$0xff]  ;;  %v1243_v8 = vld [vmem:[#allocation8 + $0x98] sm:$0xff] }
 0x142   :  { %2582 = vmatprep.subr.bf16.mxu1 %v2581_v17  ;;  %v2601_v17 = vpack.c.bf16 %v561_v10, %v557_v9  ;;  %v129_v7 = vld [vmem:[#allocation2 + $0x68] sm:$0xff] }
 0x143   :  { %819 = vmatmul.mubr.f32.vlgmr.msra.gmra.mrb[0].mxu0 %v120_v23  ;;  %v1247_v9 = vld [vmem:[#allocation8 + $0xb8] sm:$0xff] }
 0x144   :  { %2360 = vmatpush1.bf16.msra.mxu0 %v2359_v24  ;;  %1127 = vmatmul.mubr.f32.vlgmr.msra.gmra.mrb[0].mxu1 %v120_v23  ;;  %v2379_v23 = vpack.c.bf16 %v558_v15, %v554_v14  ;;  %v2603_v24 = vpack.c.bf16 %v560_v18, %v556_v16  ;;  %v1244_v14 = vld [vmem:[#allocation8 + $0xa0] sm:$0xff]  ;;  %v1242_v15 = vld [vmem:[#allocation8 + $0x90] sm:$0xff]  ;;  %v2749_v16 = vpack.c.bf16 %v1247_v9, %v1243_v8  ;;  %v1249_v18 = vld [vmem:[#allocation8 + $0xc8] sm:$0xff] }
 0x145   :  { %2584 = vmatpush1.bf16.msra.mxu1 %v2583_v25  ;;  %2362 = vmatprep.subr.bf16.mxu0 %v2361_v26  ;;  %v2381_v25 = vpack.c.bf16 %v567_v20, %v563_v19  ;;  %v562_v26 = vld [vmem:[#allocation5 + $0xd80] sm:$0xff]  ;;  %v1253_v19 = vld [vmem:[#allocation8 + $0xe8] sm:$0xff] }
 0x146   :  { %2586 = vmatprep.subr.bf16.mxu1 %v2585_v30  ;;  %824 = vmatprep.mubr.f32.mxu0 %v128_v36  ;;  %v568_v30 = vld [vmem:[#allocation5 + $0xdb0] sm:$0xff]  ;;  %v2383_v35 = vpack.c.bf16 %v566_v27, %v562_v26  ;;  %v1251_v20 = vld [vmem:[#allocation8 + $0xd8] sm:$0xff]  ;;  %v1280_v9 = vld [vmem:[#allocation8 + $0x1c0] sm:$0xff] }
 0x147   :  { %1132 = vmatprep.mubr.f32.mxu1 %v128_v36  ;;  %825 = vmatmul.mubr.f32.gmra.mrb[2].mxu0 %v127_v38  ;;  %v2607_v36 = vpack.c.bf16 %v568_v30, %v564_v28  ;;  %v1250_v26 = vld [vmem:[#allocation8 + $0xd0] sm:$0xff]  ;;  %v2753_v27 = vpack.c.bf16 %v1255_v21, %v1251_v20  ;;  %v1261_v30 = vld [vmem:[#allocation8 + $0x128] sm:$0xff]  ;;  %v1288_v21 = vld [vmem:[#allocation8 + $0x200] sm:$0xff] }
 0x148   :  { %2364 = vmatpush1.bf16.msra.mxu0 %v2363_v37  ;;  %1133 = vmatmul.mubr.f32.gmra.mrb[2].mxu1 %v127_v38  ;;  %v2385_v37 = vpack.c.bf16 %v575_v32, %v571_v31  ;;  %v570_v38 = vld [vmem:[#allocation5 + $0xdc0] sm:$0xff]  ;;  %v1254_v28 = vld [vmem:[#allocation8 + $0xf0] sm:$0xff] }
 0x149   :  { %2588 = vmatpush1.bf16.msra.mxu1 %v2587_v39  ;;  %2366 = vmatprep.subr.bf16.mxu0 %v2365_v40  ;;  %v574_v39 = vld [vmem:[#allocation5 + $0xde0] sm:$0xff]  ;;  %v572_v40 = vld [vmem:[#allocation5 + $0xdd0] sm:$0xff]  ;;  %v2755_v34 = vpack.c.bf16 %v1254_v28, %v1250_v26 }
 0x14a   :  { %2590 = vmatprep.subr.bf16.mxu1 %v2589_v44  ;;  %895 = vmatprep.mubr.f32.mxu0 %v3235_v60  ;;  %v1229_v44 = vld [vmem:[#allocation8 + $0x28] sm:$0xff]  ;;  %v2387_v47 = vpack.c.bf16 %v574_v39, %v570_v38  ;;  %v2611_v48 = vpack.c.bf16 %v576_v42, %v572_v40  ;;  %v1259_v31 = vld [vmem:[#allocation8 + $0x118] sm:$0xff]  ;;  %v1258_v38 = vld [vmem:[#allocation8 + $0x110] sm:$0xff] }
 0x14b   :  { %1203 = vmatprep.mubr.f32.mxu1 %v3235_v60  ;;  %v2613_v49 = vpack.c.bf16 %v1229_v44, %v1225_v43  ;;  %v1263_v32 = vld [vmem:[#allocation8 + $0x138] sm:$0xff]  ;;  %v1262_v40 = vld [vmem:[#allocation8 + $0x130] sm:$0xff]  ;;  %v1269_v42 = vld [vmem:[#allocation8 + $0x168] sm:$0xff] }
 0x14c   :  { %2368 = vmatpush1.bf16.msra.mxu0 %v2367_v50  ;;  %v2741_v50 = vpack.c.bf16 %v1231_v46, %v1227_v45  ;;  %v2757_v39 = vpack.c.bf16 %v1263_v32, %v1259_v31  ;;  %v1267_v43 = vld [vmem:[#allocation8 + $0x158] sm:$0xff]  ;;  %v2759_v46 = vpack.c.bf16 %v1262_v40, %v1258_v38  ;;  %v1301_v26 = vld [vmem:[#allocation8 + $0x268] sm:$0xff]  ;;  %v1296_v32 = vld [vmem:[#allocation8 + $0x240] sm:$0xff] }
 0x14d   :  { %2592 = vmatpush1.bf16.msra.mxu1 %v2591_v51  ;;  %2370 = vmatprep.subr.bf16.mxu0 %v2369_v52  ;;  %v1224_v51 = vld [vmem:[#allocation8] sm:$0xff]  ;;  %v1271_v44 = vld [vmem:[#allocation8 + $0x178] sm:$0xff]  ;;  %v1309_v38 = vld [vmem:[#allocation8 + $0x2a8] sm:$0xff] }
 0x14e   :  { %2594 = vmatprep.subr.bf16.mxu1 %v2593_v56  ;;  %v1228_v52 = vld [vmem:[#allocation8 + $0x20] sm:$0xff]  ;;  %v1237_v56 = vld [vmem:[#allocation8 + $0x68] sm:$0xff]  ;;  %v1303_v28 = vld [vmem:[#allocation8 + $0x278] sm:$0xff] }
 0x14f   :  { %v2615_v61 = vpack.c.bf16 %v1228_v52, %v1224_v51  ;;  %v2761_v51 = vpack.c.bf16 %v1271_v44, %v1267_v43  ;;  %v1270_v52 = vld [vmem:[#allocation8 + $0x170] sm:$0xff]  ;;  %v1311_v40 = vld [vmem:[#allocation8 + $0x2b8] sm:$0xff]  ;;  %v1304_v44 = vld [vmem:[#allocation8 + $0x280] sm:$0xff] }
 0x150   :  { %2372 = vmatpush1.bf16.msra.mxu0 %v2371_v63  ;;  %v2617_v63 = vpack.c.bf16 %v1237_v56, %v1233_v55  ;;  %v1275_v55 = vld [vmem:[#allocation8 + $0x198] sm:$0xff] }
 0x151   :  { %2596 = vmatpush1.bf16.msra.mxu1 %v2595_v0  ;;  %2374 = vmatprep.subr.bf16.mxu0 %v2373_v1  ;;  %v1232_v0 = vld [vmem:[#allocation8 + $0x40] sm:$0xff]  ;;  %v1279_v56 = vld [vmem:[#allocation8 + $0x1b8] sm:$0xff] }
 0x152   :  { %2598 = vmatprep.subr.bf16.mxu1 %v2597_v5  ;;  %v1236_v1 = vld [vmem:[#allocation8 + $0x60] sm:$0xff]  ;;  %v1241_v5 = vld [vmem:[#allocation8 + $0x88] sm:$0xff] }
 0x153   :  { %v2619_v10 = vpack.c.bf16 %v1236_v1, %v1232_v0  ;;  %v2765_v0 = vpack.c.bf16 %v1279_v56, %v1275_v55  ;;  %v1278_v1 = vld [vmem:[#allocation8 + $0x1b0] sm:$0xff]  ;;  %v1312_v56 = vld [vmem:[#allocation8 + $0x2c0] sm:$0xff] }
 0x154   :  { %2376 = vmatpush1.bf16.msra.mxu0 %v2375_v11  ;;  %v2747_v11 = vpack.c.bf16 %v1238_v4, %v1234_v2  ;;  %v1281_v2 = vld [vmem:[#allocation8 + $0x1c8] sm:$0xff]  ;;  %v1283_v4 = vld [vmem:[#allocation8 + $0x1d8] sm:$0xff] }
 0x155   :  { %2600 = vmatpush1.bf16.msra.mxu1 %v2599_v12  ;;  %2378 = vmatprep.subr.bf16.mxu0 %v2377_v13  ;;  %v2621_v12 = vpack.c.bf16 %v1245_v6, %v1241_v5  ;;  %v1240_v13 = vld [vmem:[#allocation8 + $0x80] sm:$0xff]  ;;  %v1287_v5 = vld [vmem:[#allocation8 + $0x1f8] sm:$0xff] }
 0x156   :  { %2602 = vmatprep.subr.bf16.mxu1 %v2601_v17  ;;  %v1246_v17 = vld [vmem:[#allocation8 + $0xb0] sm:$0xff] }
 0x157   :  { %v2751_v22 = vpack.c.bf16 %v1246_v17, %v1242_v15  ;;  %v1293_v15 = vld [vmem:[#allocation8 + $0x228] sm:$0xff]  ;;  %v1295_v17 = vld [vmem:[#allocation8 + $0x238] sm:$0xff] }
 0x158   :  { %2380 = vmatpush1.bf16.msra.mxu0 %v2379_v23  ;;  %v2625_v23 = vpack.c.bf16 %v1253_v19, %v1249_v18 }
 0x159   :  { %2604 = vmatpush1.bf16.msra.mxu1 %v2603_v24  ;;  %2382 = vmatprep.subr.bf16.mxu0 %v2381_v25  ;;  %v1248_v24 = vld [vmem:[#allocation8 + $0xc0] sm:$0xff] }
 0x15a   :  { %2606 = vmatprep.subr.bf16.mxu1 %v2605_v29  ;;  %v1252_v25 = vld [vmem:[#allocation8 + $0xe0] sm:$0xff]  ;;  %v1257_v29 = vld [vmem:[#allocation8 + $0x108] sm:$0xff] }
 0x15b   :  { %v2627_v33 = vpack.c.bf16 %v1252_v25, %v1248_v24  ;;  %v1294_v24 = vld [vmem:[#allocation8 + $0x230] sm:$0xff]  ;;  %v1297_v25 = vld [vmem:[#allocation8 + $0x248] sm:$0xff] }
 0x15c   :  { %2384 = vmatpush1.bf16.msra.mxu0 %v2383_v35  ;;  %v2629_v35 = vpack.c.bf16 %v1261_v30, %v1257_v29  ;;  %v2649_v31 = vpack.c.bf16 %v1301_v26, %v1297_v25  ;;  %v1339_v25 = vld [vmem:[#allocation8 + $0x398] sm:$0xff] }
 0x15d   :  { %2608 = vmatpush1.bf16.msra.mxu1 %v2607_v36  ;;  %2386 = vmatprep.subr.bf16.mxu0 %v2385_v37  ;;  %v1256_v36 = vld [vmem:[#allocation8 + $0x100] sm:$0xff] }
 0x15e   :  { %2610 = vmatprep.subr.bf16.mxu1 %v2609_v41  ;;  %v1260_v37 = vld [vmem:[#allocation8 + $0x120] sm:$0xff]  ;;  %v1265_v41 = vld [vmem:[#allocation8 + $0x148] sm:$0xff] }
 0x15f   :  { %v2631_v45 = vpack.c.bf16 %v1260_v37, %v1256_v36  ;;  %v1302_v36 = vld [vmem:[#allocation8 + $0x270] sm:$0xff]  ;;  %v1305_v37 = vld [vmem:[#allocation8 + $0x288] sm:$0xff] }
 0x160   :  { %2388 = vmatpush1.bf16.msra.mxu0 %v2387_v47  ;;  %v2633_v47 = vpack.c.bf16 %v1269_v42, %v1265_v41  ;;  %v2653_v43 = vpack.c.bf16 %v1309_v38, %v1305_v37  ;;  %v1347_v37 = vld [vmem:[#allocation8 + $0x3d8] sm:$0xff] }
 0x161   :  { %2612 = vmatpush1.bf16.msra.mxu1 %v2611_v48  ;;  %2614 = vmatprep.subr.bf16.mxu0 %v2613_v49  ;;  %v1264_v48 = vld [vmem:[#allocation8 + $0x140] sm:$0xff] }
 0x162   :  { %2742 = vmatprep.subr.bf16.mxu1 %v2741_v50  ;;  %v1268_v49 = vld [vmem:[#allocation8 + $0x160] sm:$0xff]  ;;  %v1266_v50 = vld [vmem:[#allocation8 + $0x150] sm:$0xff] }
 0x163   :  { %896 = vmatmul.mubr.f32.vlgmr.msra.gmra.mrb[0].mxu0 %v122_v57  ;;  %v2763_v58 = vpack.c.bf16 %v1270_v52, %v1266_v50  ;;  %v1317_v50 = vld [vmem:[#allocation8 + $0x2e8] sm:$0xff]  ;;  %v1319_v52 = vld [vmem:[#allocation8 + $0x2f8] sm:$0xff] }
 0x164   :  { %1204 = vmatmul.mubr.f32.vlgmr.msra.gmra.mrb[0].mxu1 %v122_v57  ;;  %901 = vmatprep.mubr.f32.mxu0 %v3235_v60  ;;  %v2635_v57 = vpack.c.bf16 %v1268_v49, %v1264_v48  ;;  %v1310_v48 = vld [vmem:[#allocation8 + $0x2b0] sm:$0xff]  ;;  %v1313_v49 = vld [vmem:[#allocation8 + $0x2c8] sm:$0xff] }
 0x165   :  { %1209 = vmatprep.mubr.f32.mxu1 %v3235_v60  ;;  %2616 = vmatpush1.bf16.msra.mxu0 %v2615_v61  ;;  %v2623_v60 = vpack.c.bf16 %v1244_v14, %v1240_v13  ;;  %v1272_v61 = vld [vmem:[#allocation8 + $0x180] sm:$0xff]  ;;  %v1286_v13 = vld [vmem:[#allocation8 + $0x1f0] sm:$0xff]  ;;  %v1289_v14 = vld [vmem:[#allocation8 + $0x208] sm:$0xff]  ;;  %v2657_v55 = vpack.c.bf16 %v1317_v50, %v1313_v49 }
 0x166   :  { %2744 = vmatpush1.bf16.msra.mxu1 %v2743_v62  ;;  %2618 = vmatprep.subr.bf16.mxu0 %v2617_v63  ;;  %v1276_v62 = vld [vmem:[#allocation8 + $0x1a0] sm:$0xff]  ;;  %v1274_v63 = vld [vmem:[#allocation8 + $0x190] sm:$0xff]  ;;  %v2645_v20 = vpack.c.bf16 %v1293_v15, %v1289_v14  ;;  %v1331_v14 = vld [vmem:[#allocation8 + $0x358] sm:$0xff] }
 0x167   :  { %902 = vmatmul.mubr.f32.gmra.mrb[2].mxu0 %v129_v7  ;;  %2746 = vmatprep.subr.bf16.mxu1 %v2745_v3  ;;  %v1285_v3 = vld [vmem:[#allocation8 + $0x1e8] sm:$0xff]  ;;  %v2639_v6 = vpack.c.bf16 %v1276_v62, %v1272_v61  ;;  %v1318_v61 = vld [vmem:[#allocation8 + $0x2f0] sm:$0xff]  ;;  %v1355_v49 = vld [vmem:[#allocation8 + $0x418] sm:$0xff] }
 0x168   :  { %1210 = vmatmul.mubr.f32.gmra.mrb[2].mxu1 %v129_v7  ;;  %v2767_v7 = vpack.c.bf16 %v1278_v1, %v1274_v63  ;;  %v2641_v8 = vpack.c.bf16 %v1285_v3, %v1281_v2  ;;  %v1321_v62 = vld [vmem:[#allocation8 + $0x308] sm:$0xff]  ;;  %v1327_v1 = vld [vmem:[#allocation8 + $0x338] sm:$0xff] }
 0x169   :  { %2620 = vmatpush1.bf16.msra.mxu0 %v2619_v10  ;;  %v1284_v10 = vld [vmem:[#allocation8 + $0x1e0] sm:$0xff]  ;;  %v1325_v63 = vld [vmem:[#allocation8 + $0x328] sm:$0xff] }
 0x16a   :  { %2748 = vmatpush1.bf16.msra.mxu1 %v2747_v11  ;;  %2622 = vmatprep.subr.bf16.mxu0 %v2621_v12  ;;  %v1282_v11 = vld [vmem:[#allocation8 + $0x1d0] sm:$0xff]  ;;  %v2769_v12 = vpack.c.bf16 %v1287_v5, %v1283_v4  ;;  %v2643_v18 = vpack.c.bf16 %v1284_v10, %v1280_v9  ;;  %v2661_v4 = vpack.c.bf16 %v1325_v63, %v1321_v62 }
 0x16b   :  { %2750 = vmatprep.subr.bf16.mxu1 %v2749_v16  ;;  %v1291_v16 = vld [vmem:[#allocation8 + $0x218] sm:$0xff]  ;;  %v2771_v19 = vpack.c.bf16 %v1286_v13, %v1282_v11  ;;  %v1326_v10 = vld [vmem:[#allocation8 + $0x330] sm:$0xff]  ;;  %v1333_v13 = vld [vmem:[#allocation8 + $0x368] sm:$0xff] }
 0x16d   :  { %2624 = vmatpush1.bf16.msra.mxu0 %v2623_v60  ;;  %v1292_v60 = vld [vmem:[#allocation8 + $0x220] sm:$0xff] }
 0x16e   :  { %2752 = vmatpush1.bf16.msra.mxu1 %v2751_v22  ;;  %2626 = vmatprep.subr.bf16.mxu0 %v2625_v23  ;;  %v1290_v22 = vld [vmem:[#allocation8 + $0x210] sm:$0xff]  ;;  %v2773_v23 = vpack.c.bf16 %v1295_v17, %v1291_v16  ;;  %v2647_v29 = vpack.c.bf16 %v1292_v60, %v1288_v21  ;;  %v1335_v16 = vld [vmem:[#allocation8 + $0x378] sm:$0xff]  ;;  %v1328_v17 = vld [vmem:[#allocation8 + $0x340] sm:$0xff] }
 0x16f   :  { %2754 = vmatprep.subr.bf16.mxu1 %v2753_v27  ;;  %v1299_v27 = vld [vmem:[#allocation8 + $0x258] sm:$0xff]  ;;  %v2775_v30 = vpack.c.bf16 %v1294_v24, %v1290_v22  ;;  %v1330_v21 = vld [vmem:[#allocation8 + $0x350] sm:$0xff]  ;;  %v1341_v24 = vld [vmem:[#allocation8 + $0x3a8] sm:$0xff] }
 0x170   :  { %v1334_v60 = vld [vmem:[#allocation8 + $0x370] sm:$0xff] }
 0x171   :  { %2628 = vmatpush1.bf16.msra.mxu0 %v2627_v33  ;;  %v1300_v33 = vld [vmem:[#allocation8 + $0x260] sm:$0xff]  ;;  %v2795_v22 = vpack.c.bf16 %v1334_v60, %v1330_v21 }
 0x172   :  { %2756 = vmatpush1.bf16.msra.mxu1 %v2755_v34  ;;  %2630 = vmatprep.subr.bf16.mxu0 %v2629_v35  ;;  %v1298_v34 = vld [vmem:[#allocation8 + $0x250] sm:$0xff]  ;;  %v2777_v35 = vpack.c.bf16 %v1303_v28, %v1299_v27  ;;  %v2651_v41 = vpack.c.bf16 %v1300_v33, %v1296_v32  ;;  %v1343_v27 = vld [vmem:[#allocation8 + $0x3b8] sm:$0xff]  ;;  %v1336_v28 = vld [vmem:[#allocation8 + $0x380] sm:$0xff] }
 0x173   :  { %2758 = vmatprep.subr.bf16.mxu1 %v2757_v39  ;;  %v1307_v39 = vld [vmem:[#allocation8 + $0x298] sm:$0xff]  ;;  %v2779_v42 = vpack.c.bf16 %v1302_v36, %v1298_v34  ;;  %v1338_v32 = vld [vmem:[#allocation8 + $0x390] sm:$0xff]  ;;  %v1349_v36 = vld [vmem:[#allocation8 + $0x3e8] sm:$0xff] }
 0x174   :  { %v1342_v33 = vld [vmem:[#allocation8 + $0x3b0] sm:$0xff]  ;;  %v1360_v60 = vld [vmem:[#allocation8 + $0x440] sm:$0xff] }
 0x175   :  { %2632 = vmatpush1.bf16.msra.mxu0 %v2631_v45  ;;  %v1308_v45 = vld [vmem:[#allocation8 + $0x2a0] sm:$0xff]  ;;  %v2799_v34 = vpack.c.bf16 %v1342_v33, %v1338_v32  ;;  %v1375_v32 = vld [vmem:[#allocation8 + $0x4b8] sm:$0xff] }
 0x176   :  { %2760 = vmatpush1.bf16.msra.mxu1 %v2759_v46  ;;  %2634 = vmatprep.subr.bf16.mxu0 %v2633_v47  ;;  %v1306_v46 = vld [vmem:[#allocation8 + $0x290] sm:$0xff]  ;;  %v2781_v47 = vpack.c.bf16 %v1311_v40, %v1307_v39  ;;  %v2655_v53 = vpack.c.bf16 %v1308_v45, %v1304_v44  ;;  %v1351_v39 = vld [vmem:[#allocation8 + $0x3f8] sm:$0xff]  ;;  %v1344_v40 = vld [vmem:[#allocation8 + $0x3c0] sm:$0xff] }
 0x177   :  { %2762 = vmatprep.subr.bf16.mxu1 %v2761_v51  ;;  %v1315_v51 = vld [vmem:[#allocation8 + $0x2d8] sm:$0xff]  ;;  %v2783_v54 = vpack.c.bf16 %v1310_v48, %v1306_v46  ;;  %v1346_v44 = vld [vmem:[#allocation8 + $0x3d0] sm:$0xff]  ;;  %v1357_v48 = vld [vmem:[#allocation8 + $0x428] sm:$0xff] }
 0x178   :  { %v1350_v45 = vld [vmem:[#allocation8 + $0x3f0] sm:$0xff] }
 0x179   :  { %2636 = vmatpush1.bf16.msra.mxu0 %v2635_v57  ;;  %v1316_v57 = vld [vmem:[#allocation8 + $0x2e0] sm:$0xff]  ;;  %v2803_v46 = vpack.c.bf16 %v1350_v45, %v1346_v44  ;;  %v1381_v44 = vld [vmem:[#allocation8 + $0x4e8] sm:$0xff]  ;;  %v1379_v45 = vld [vmem:[#allocation8 + $0x4d8] sm:$0xff] }
 0x17a   :  { %2764 = vmatpush1.bf16.msra.mxu1 %v2763_v58  ;;  %2638 = vmatprep.subr.bf16.mxu0 %v2637_v59  ;;  %v1314_v58 = vld [vmem:[#allocation8 + $0x2d0] sm:$0xff]  ;;  %v2785_v59 = vpack.c.bf16 %v1319_v52, %v1315_v51  ;;  %v2659_v2 = vpack.c.bf16 %v1316_v57, %v1312_v56  ;;  %v1359_v51 = vld [vmem:[#allocation8 + $0x438] sm:$0xff] }
 0x17b   :  { %2766 = vmatprep.subr.bf16.mxu1 %v2765_v0  ;;  %v1323_v0 = vld [vmem:[#allocation8 + $0x318] sm:$0xff]  ;;  %v2787_v3 = vpack.c.bf16 %v1318_v61, %v1314_v58  ;;  %v2805_v52 = vpack.c.bf16 %v1359_v51, %v1355_v49  ;;  %v1380_v51 = vld [vmem:[#allocation8 + $0x4e0] sm:$0xff] }
 0x17c   :  { %v2789_v5 = vpack.c.bf16 %v1327_v1, %v1323_v0  ;;  %v3373_v57 = vld [vmem:[#allocation7] sm:$0xf] }
 0x17d   :  { %2640 = vmatpush1.bf16.msra.mxu0 %v2639_v6  ;;  %v1320_v6 = vld [vmem:[#allocation8 + $0x300] sm:$0xff] }
 0x17e   :  { %2768 = vmatpush1.bf16.msra.mxu1 %v2767_v7  ;;  %2642 = vmatprep.subr.bf16.mxu0 %v2641_v8  ;;  %v1324_v7 = vld [vmem:[#allocation8 + $0x320] sm:$0xff]  ;;  %v1322_v8 = vld [vmem:[#allocation8 + $0x310] sm:$0xff] }
 0x17f   :  { %2770 = vmatprep.subr.bf16.mxu1 %v2769_v12  ;;  %v2663_v9 = vpack.c.bf16 %v1324_v7, %v1320_v6  ;;  %v2791_v11 = vpack.c.bf16 %v1326_v10, %v1322_v8  ;;  %v1329_v12 = vld [vmem:[#allocation8 + $0x348] sm:$0xff] }
 0x180   :  { %v2665_v15 = vpack.c.bf16 %v1333_v13, %v1329_v12  ;;  %v1352_v12 = vld [vmem:[#allocation8 + $0x400] sm:$0xff] }
 0x181   :  { %2644 = vmatpush1.bf16.msra.mxu0 %v2643_v18  ;;  %v1332_v18 = vld [vmem:[#allocation8 + $0x360] sm:$0xff] }
 0x182   :  { %2772 = vmatpush1.bf16.msra.mxu1 %v2771_v19  ;;  %2646 = vmatprep.subr.bf16.mxu0 %v2645_v20  ;;  %v2793_v19 = vpack.c.bf16 %v1335_v16, %v1331_v14  ;;  %v2667_v20 = vpack.c.bf16 %v1332_v18, %v1328_v17  ;;  %v1356_v13 = vld [vmem:[#allocation8 + $0x420] sm:$0xff]  ;;  %v1354_v14 = vld [vmem:[#allocation8 + $0x410] sm:$0xff]  ;;  %v1361_v16 = vld [vmem:[#allocation8 + $0x448] sm:$0xff] }
 0x183   :  { %2774 = vmatprep.subr.bf16.mxu1 %v2773_v23  ;;  %v1337_v23 = vld [vmem:[#allocation8 + $0x388] sm:$0xff]  ;;  %v1363_v18 = vld [vmem:[#allocation8 + $0x458] sm:$0xff] }
 0x184   :  { %v2669_v26 = vpack.c.bf16 %v1341_v24, %v1337_v23  ;;  %v1365_v17 = vld [vmem:[#allocation8 + $0x468] sm:$0xff] }
 0x185   :  { %2648 = vmatpush1.bf16.msra.mxu0 %v2647_v29  ;;  %v1340_v29 = vld [vmem:[#allocation8 + $0x3a0] sm:$0xff]  ;;  %v2681_v23 = vpack.c.bf16 %v1365_v17, %v1361_v16  ;;  %v1397_v16 = vld [vmem:[#allocation8 + $0x568] sm:$0xff]  ;;  %v1395_v17 = vld [vmem:[#allocation8 + $0x558] sm:$0xff] }
 0x186   :  { %2776 = vmatpush1.bf16.msra.mxu1 %v2775_v30  ;;  %2650 = vmatprep.subr.bf16.mxu0 %v2649_v31  ;;  %v2797_v30 = vpack.c.bf16 %v1343_v27, %v1339_v25  ;;  %v2671_v31 = vpack.c.bf16 %v1340_v29, %v1336_v28  ;;  %v1364_v25 = vld [vmem:[#allocation8 + $0x460] sm:$0xff]  ;;  %v1366_v27 = vld [vmem:[#allocation8 + $0x470] sm:$0xff]  ;;  %v1369_v29 = vld [vmem:[#allocation8 + $0x488] sm:$0xff] }
 0x187   :  { %2778 = vmatprep.subr.bf16.mxu1 %v2777_v35  ;;  %v1345_v35 = vld [vmem:[#allocation8 + $0x3c8] sm:$0xff]  ;;  %v2683_v33 = vpack.c.bf16 %v1364_v25, %v1360_v60  ;;  %v1396_v60 = vld [vmem:[#allocation8 + $0x560] sm:$0xff]  ;;  %v1398_v25 = vld [vmem:[#allocation8 + $0x570] sm:$0xff] }
 0x188   :  { %v2673_v38 = vpack.c.bf16 %v1349_v36, %v1345_v35  ;;  %v1368_v35 = vld [vmem:[#allocation8 + $0x480] sm:$0xff] }
 0x189   :  { %2652 = vmatpush1.bf16.msra.mxu0 %v2651_v41  ;;  %v1348_v41 = vld [vmem:[#allocation8 + $0x3e0] sm:$0xff] }
 0x18a   :  { %2780 = vmatpush1.bf16.msra.mxu1 %v2779_v42  ;;  %2654 = vmatprep.subr.bf16.mxu0 %v2653_v43  ;;  %v2801_v42 = vpack.c.bf16 %v1351_v39, %v1347_v37  ;;  %v2675_v43 = vpack.c.bf16 %v1348_v41, %v1344_v40  ;;  %v1372_v36 = vld [vmem:[#allocation8 + $0x4a0] sm:$0xff]  ;;  %v1374_v39 = vld [vmem:[#allocation8 + $0x4b0] sm:$0xff]  ;;  %v1377_v40 = vld [vmem:[#allocation8 + $0x4c8] sm:$0xff] }
 0x18b   :  { %2782 = vmatprep.subr.bf16.mxu1 %v2781_v47  ;;  %v1353_v47 = vld [vmem:[#allocation8 + $0x408] sm:$0xff] }
 0x18c   :  { %v2677_v50 = vpack.c.bf16 %v1357_v48, %v1353_v47  ;;  %v2687_v48 = vpack.c.bf16 %v1372_v36, %v1368_v35  ;;  %v1402_v36 = vld [vmem:[#allocation8 + $0x590] sm:$0xff] }
 0x18d   :  { %2656 = vmatpush1.bf16.msra.mxu0 %v2655_v53  ;;  %v580_v53 = vlaneseq }
 0x18e   :  { %2784 = vmatpush1.bf16.msra.mxu1 %v2783_v54  ;;  %2658 = vmatprep.subr.bf16.mxu0 %v2657_v55 }
 0x18f   :  { %2786 = vmatprep.subr.bf16.mxu1 %v2785_v59  ;;  %v3369_v54 = vshrl.u32 %v580_v53, 7 }
 0x191   :  { %2660 = vmatpush1.bf16.msra.mxu0 %v2659_v2  ;;  %v582_v55 = vsub.s32 0, %v3369_v54  ;;  %v586_v56 = vsub.s32 1, %v3369_v54  ;;  %v594_v62 = vsub.s32 3, %v3369_v54 }
 0x192   :  { %2788 = vmatpush1.bf16.msra.mxu1 %v2787_v3  ;;  %2662 = vmatprep.subr.bf16.mxu0 %v2661_v4 }
 0x193   :  { %2790 = vmatprep.subr.bf16.mxu1 %v2789_v5  ;;  %v583_v58 = vrot.slane %v3373_v57, %v582_v55  ;;  %v587_v59 = vrot.slane %v3373_v57, %v586_v56  ;;  %v3387_v4 = vrot.slane %v3373_v57, %v594_v62 }
 0x195   :  { %2664 = vmatpush1.bf16.msra.mxu0 %v2663_v9 }
 0x196   :  { %2792 = vmatpush1.bf16.msra.mxu1 %v2791_v11  ;;  %2666 = vmatprep.subr.bf16.mxu0 %v2665_v15  ;;  %v1358_v15 = vld [vmem:[#allocation8 + $0x430] sm:$0xff] }
 0x197   :  { %2794 = vmatprep.subr.bf16.mxu1 %v2793_v19  ;;  %v1367_v19 = vld [vmem:[#allocation8 + $0x478] sm:$0xff]  ;;  %v2807_v21 = vpack.c.bf16 %v1358_v15, %v1354_v14  ;;  %v1390_v14 = vld [vmem:[#allocation8 + $0x530] sm:$0xff]  ;;  %v1393_v15 = vld [vmem:[#allocation8 + $0x548] sm:$0xff] }
 0x198   :  { %v2809_v24 = vpack.c.bf16 %v1367_v19, %v1363_v18  ;;  %v1399_v18 = vld [vmem:[#allocation8 + $0x578] sm:$0xff] }
 0x199   :  { %2668 = vmatpush1.bf16.msra.mxu0 %v2667_v20  ;;  %v2679_v20 = vpack.c.bf16 %v1356_v13, %v1352_v12  ;;  %v1386_v13 = vld [vmem:[#allocation8 + $0x510] sm:$0xff] }
 0x19a   :  { %2796 = vmatpush1.bf16.msra.mxu1 %v2795_v22  ;;  %2670 = vmatprep.subr.bf16.mxu0 %v2669_v26  ;;  %v1362_v26 = vld [vmem:[#allocation8 + $0x450] sm:$0xff] }
 0x19b   :  { %2798 = vmatprep.subr.bf16.mxu1 %v2797_v30  ;;  %v1373_v30 = vld [vmem:[#allocation8 + $0x4a8] sm:$0xff] }
 0x19d   :  { %2672 = vmatpush1.bf16.msra.mxu0 %v2671_v31  ;;  %v1371_v31 = vld [vmem:[#allocation8 + $0x498] sm:$0xff] }
 0x19e   :  { %2800 = vmatpush1.bf16.msra.mxu1 %v2799_v34  ;;  %2674 = vmatprep.subr.bf16.mxu0 %v2673_v38  ;;  %v2811_v34 = vpack.c.bf16 %v1366_v27, %v1362_v26  ;;  %v1370_v38 = vld [vmem:[#allocation8 + $0x490] sm:$0xff]  ;;  %v1401_v26 = vld [vmem:[#allocation8 + $0x588] sm:$0xff] }
 0x19f   :  { %2802 = vmatprep.subr.bf16.mxu1 %v2801_v42  ;;  %v2685_v42 = vpack.c.bf16 %v1373_v30, %v1369_v29  ;;  %v2815_v49 = vpack.c.bf16 %v1374_v39, %v1370_v38  ;;  %v1405_v27 = vld [vmem:[#allocation8 + $0x5a8] sm:$0xff]  ;;  %v1407_v29 = vld [vmem:[#allocation8 + $0x5b8] sm:$0xff] }
 0x1a0   :  { %v1409_v38 = vld [vmem:[#allocation8 + $0x5c8] sm:$0xff] }
 0x1a1   :  { %2676 = vmatpush1.bf16.msra.mxu0 %v2675_v43  ;;  %v2813_v43 = vpack.c.bf16 %v1375_v32, %v1371_v31  ;;  %v1400_v32 = vld [vmem:[#allocation8 + $0x580] sm:$0xff]  ;;  %v1413_v39 = vld [vmem:[#allocation8 + $0x5e8] sm:$0xff] }
 0x1a2   :  { %2804 = vmatpush1.bf16.msra.mxu1 %v2803_v46  ;;  %2678 = vmatprep.subr.bf16.mxu0 %v2677_v50  ;;  %v1383_v46 = vld [vmem:[#allocation8 + $0x4f8] sm:$0xff]  ;;  %v1376_v50 = vld [vmem:[#allocation8 + $0x4c0] sm:$0xff] }
 0x1a3   :  { %2806 = vmatprep.subr.bf16.mxu1 %v2805_v52  ;;  %v2689_v52 = vpack.c.bf16 %v1381_v44, %v1377_v40  ;;  %v1411_v40 = vld [vmem:[#allocation8 + $0x5d8] sm:$0xff]  ;;  %v1408_v44 = vld [vmem:[#allocation8 + $0x5c0] sm:$0xff] }
 0x236   :  { %v897_v61 = vpop.f32.mrb[0].mxu0 }
 0x237   :  { %v3382_v63 = vpop.f32.mrb[0].mxu1  ;;  %v899_v0 = vpop.f32.mrb[1].mxu0  ;;  %v2933_v1 = vadd.f32 %v897_v61, %v583_v58  ;;  %v1382_v61 = vld [vmem:[#allocation8 + $0x4f0] sm:$0xff] }
 0x238   :  { %v2934_v2 = vadd.f32 %v899_v0, %v587_v59  ;;  %v1207_v3 = vpop.f32.mrb[1].mxu1  ;;  %v1385_v0 = vld [vmem:[#allocation8 + $0x508] sm:$0xff] }
 0x239   :  { %v2938_v11 = vadd.f32 %v1207_v3, %v3387_v4  ;;  %v1391_v3 = vld [vmem:[#allocation8 + $0x538] sm:$0xff] }
 0x23a   :  { %v903_v5 = vpop.f32.mrb[2].mxu0  ;;  %2996 = vtanh.f32 %v2934_v2  ;;  %v1387_v2 = vld [vmem:[#allocation8 + $0x518] sm:$0xff] }
 0x23b   :  { %v3389_v6 = vpop.f32.mrb[2].mxu1  ;;  %v905_v7 = vpop.f32.mrb[3].mxu0  ;;  %2998 = vtanh.f32 %v2933_v1  ;;  %v2935_v8 = vadd.f32 %v903_v5, %v583_v58  ;;  %v2817_v58 = vpack.c.bf16 %v1383_v46, %v1379_v45  ;;  %v1389_v1 = vld [vmem:[#allocation8 + $0x528] sm:$0xff]  ;;  %v2691_v5 = vpack.c.bf16 %v1380_v51, %v1376_v50  ;;  %v1412_v45 = vld [vmem:[#allocation8 + $0x5e0] sm:$0xff] }
 0x23c   :  { %v2936_v9 = vadd.f32 %v905_v7, %v587_v59  ;;  %v3391_v10 = vpop.f32.mrb[3].mxu1  ;;  %v1378_v59 = vld [vmem:[#allocation8 + $0x4d0] sm:$0xff]  ;;  %v2821_v12 = vpack.c.bf16 %v1391_v3, %v1387_v2  ;;  %v2705_v46 = vpack.c.bf16 %v1413_v39, %v1409_v38  ;;  %v1417_v50 = vld [vmem:[#allocation8 + $0x608] sm:$0xff]  ;;  %v1440_v38 = vld [vmem:[#allocation8 + $0x6c0] sm:$0xff] }
 0x23d   :  { %v2819_v7 = vpack.c.bf16 %v1382_v61, %v1378_v59  ;;  %v1421_v51 = vld [vmem:[#allocation8 + $0x628] sm:$0xff]  ;;  %v2707_v59 = vpack.c.bf16 %v1412_v45, %v1408_v44  ;;  %v1444_v39 = vld [vmem:[#allocation8 + $0x6e0] sm:$0xff] }
 0x23e   :  { %3000 = vtanh.f32 %v2936_v9  ;;  %v1388_v9 = vld [vmem:[#allocation8 + $0x520] sm:$0xff]  ;;  %v2709_v2 = vpack.c.bf16 %v1421_v51, %v1417_v50  ;;  %v1449_v44 = vld [vmem:[#allocation8 + $0x708] sm:$0xff] }
 0x23f   :  { %3002 = vtanh.f32 %v2935_v8  ;;  %v1384_v8 = vld [vmem:[#allocation8 + $0x500] sm:$0xff]  ;;  %v1453_v45 = vld [vmem:[#allocation8 + $0x728] sm:$0xff] }
 0x240   :  { %3004 = vtanh.f32 %v2938_v11  ;;  %v2693_v11 = vpack.c.bf16 %v1389_v1, %v1385_v0  ;;  %v2695_v19 = vpack.c.bf16 %v1388_v9, %v1384_v8  ;;  %v1416_v0 = vld [vmem:[#allocation8 + $0x600] sm:$0xff]  ;;  %v1425_v8 = vld [vmem:[#allocation8 + $0x648] sm:$0xff] }
 0x241   :  { %v1420_v1 = vld [vmem:[#allocation8 + $0x620] sm:$0xff]  ;;  %v1429_v9 = vld [vmem:[#allocation8 + $0x668] sm:$0xff] }
 0x242   :  { %v1448_v51 = vld [vmem:[#allocation8 + $0x700] sm:$0xff] }
 0x244   :  { %v2997_v22 = vpop.eup %2996 }
 0x245   :  { %v2999_v28 = vpop.eup %2998  ;;  %1566 = vmatprep.mubr.f32.mxu0 %v2997_v22  ;;  %1720 = vmatprep.mubr.f32.mxu1 %v2997_v22  ;;  %v2697_v22 = vpack.c.bf16 %v1397_v16, %v1393_v15  ;;  %v1424_v15 = vld [vmem:[#allocation8 + $0x640] sm:$0xff] }
 0x246   :  { %1567 = vmatmul.mubr.f32.vlgmr.msra.gmra.mrb[4].mxu0 %v2999_v28  ;;  %1721 = vmatmul.mubr.f32.vlgmr.msra.gmra.mrb[4].mxu1 %v2999_v28  ;;  %v1403_v28 = vld [vmem:[#allocation8 + $0x598] sm:$0xff]  ;;  %v1428_v16 = vld [vmem:[#allocation8 + $0x660] sm:$0xff] }
 0x247   :  { %2680 = vmatpush1.bf16.msra.mxu0 %v2679_v20  ;;  %2808 = vmatpush1.bf16.msra.mxu1 %v2807_v21  ;;  %v2823_v20 = vpack.c.bf16 %v1390_v14, %v1386_v13  ;;  %v1392_v21 = vld [vmem:[#allocation8 + $0x540] sm:$0xff]  ;;  %v2829_v35 = vpack.c.bf16 %v1407_v29, %v1403_v28  ;;  %v2711_v13 = vpack.c.bf16 %v1420_v1, %v1416_v0  ;;  %v1454_v0 = vld [vmem:[#allocation8 + $0x730] sm:$0xff]  ;;  %v1457_v1 = vld [vmem:[#allocation8 + $0x748] sm:$0xff] }
 0x248   :  { %v3001_v37 = vpop.eup %3000  ;;  %2682 = vmatprep.subr.bf16.mxu0 %v2681_v23  ;;  %2810 = vmatprep.subr.bf16.mxu1 %v2809_v24  ;;  %v2825_v23 = vpack.c.bf16 %v1399_v18, %v1395_v17  ;;  %v1394_v24 = vld [vmem:[#allocation8 + $0x550] sm:$0xff]  ;;  %v2699_v30 = vpack.c.bf16 %v1396_v60, %v1392_v21  ;;  %v2713_v17 = vpack.c.bf16 %v1429_v9, %v1425_v8  ;;  %v1433_v21 = vld [vmem:[#allocation8 + $0x688] sm:$0xff] }
 0x249   :  { %v3003_v41 = vpop.eup %3002  ;;  %1572 = vmatprep.mubr.f32.mxu0 %v3001_v37  ;;  %1726 = vmatprep.mubr.f32.mxu1 %v3001_v37  ;;  %v2827_v31 = vpack.c.bf16 %v1398_v25, %v1394_v24  ;;  %v1406_v37 = vld [vmem:[#allocation8 + $0x5b0] sm:$0xff]  ;;  %v1437_v60 = vld [vmem:[#allocation8 + $0x6a8] sm:$0xff]  ;;  %v2715_v24 = vpack.c.bf16 %v1428_v16, %v1424_v15 }
 0x24a   :  { %1573 = vmatmul.mubr.f32.gmra.mrb[6].mxu0 %v3003_v41  ;;  %1727 = vmatmul.mubr.f32.gmra.mrb[6].mxu1 %v3003_v41  ;;  %v3005_v47 = vpop.eup %3004  ;;  %v1415_v41 = vld [vmem:[#allocation8 + $0x5f8] sm:$0xff]  ;;  %v2717_v28 = vpack.c.bf16 %v1437_v60, %v1433_v21  ;;  %v1458_v15 = vld [vmem:[#allocation8 + $0x750] sm:$0xff] }
 0x24b   :  { %2684 = vmatpush1.bf16.msra.mxu0 %v2683_v33  ;;  %2812 = vmatpush1.bf16.msra.mxu1 %v2811_v34  ;;  %v1404_v33 = vld [vmem:[#allocation8 + $0x5a0] sm:$0xff]  ;;  %v2701_v34 = vpack.c.bf16 %v1405_v27, %v1401_v26  ;;  %v1462_v16 = vld [vmem:[#allocation8 + $0x770] sm:$0xff] }
 0x24c   :  { %1643 = vmatprep.mubr.f32.mxu0 %v3005_v47  ;;  %1797 = vmatprep.mubr.f32.mxu1 %v3005_v47  ;;  %v2833_v47 = vpack.c.bf16 %v1415_v41, %v1411_v40  ;;  %v1432_v26 = vld [vmem:[#allocation8 + $0x680] sm:$0xff]  ;;  %v2859_v60 = vpack.c.bf16 %v1462_v16, %v1458_v15  ;;  %v1871_v15 = vld [vmem:[#allocation11 + $0x1a8] sm:$0xff] }
 0x24d   :  { %2686 = vmatprep.subr.bf16.mxu0 %v2685_v42  ;;  %2814 = vmatprep.subr.bf16.mxu1 %v2813_v43  ;;  %v2703_v42 = vpack.c.bf16 %v1404_v33, %v1400_v32  ;;  %v2831_v43 = vpack.c.bf16 %v1406_v37, %v1402_v36  ;;  %v1436_v27 = vld [vmem:[#allocation8 + $0x6a0] sm:$0xff]  ;;  %v1441_v32 = vld [vmem:[#allocation8 + $0x6c8] sm:$0xff] }
 0x24e   :  { %v1445_v33 = vld [vmem:[#allocation8 + $0x6e8] sm:$0xff]  ;;  %v2719_v36 = vpack.c.bf16 %v1436_v27, %v1432_v26  ;;  %v1466_v27 = vld [vmem:[#allocation8 + $0x790] sm:$0xff] }
 0x24f   :  { %2688 = vmatpush1.bf16.msra.mxu0 %v2687_v48  ;;  %2816 = vmatpush1.bf16.msra.mxu1 %v2815_v49  ;;  %v1410_v48 = vld [vmem:[#allocation8 + $0x5d0] sm:$0xff]  ;;  %v2721_v40 = vpack.c.bf16 %v1445_v33, %v1441_v32  ;;  %v1479_v32 = vld [vmem:[#allocation8 + $0x7f8] sm:$0xff] }
 0x250   :  { %2690 = vmatprep.subr.bf16.mxu0 %v2689_v52  ;;  %2818 = vmatprep.subr.bf16.mxu1 %v2817_v58  ;;  %v1414_v49 = vld [vmem:[#allocation8 + $0x5f0] sm:$0xff]  ;;  %v1419_v52 = vld [vmem:[#allocation8 + $0x618] sm:$0xff] }
 0x251   :  { %v1423_v58 = vld [vmem:[#allocation8 + $0x638] sm:$0xff]  ;;  %v2835_v61 = vpack.c.bf16 %v1414_v49, %v1410_v48  ;;  %v590_v48 = vsub.s32 2, %v3369_v54  ;;  %v2723_v49 = vpack.c.bf16 %v1444_v39, %v1440_v38  ;;  %v1478_v38 = vld [vmem:[#allocation8 + $0x7f0] sm:$0xff]  ;;  %v1834_v39 = vld [vmem:[#allocation11 + $0x80] sm:$0xff] }
 0x252   :  { %v2837_v3 = vpack.c.bf16 %v1423_v58, %v1419_v52  ;;  %v1452_v52 = vld [vmem:[#allocation8 + $0x720] sm:$0xff]  ;;  %v2725_v58 = vpack.c.bf16 %v1453_v45, %v1449_v44 }
 0x253   :  { %2692 = vmatpush1.bf16.msra.mxu0 %v2691_v5  ;;  %2820 = vmatpush1.bf16.msra.mxu1 %v2819_v7  ;;  %v1418_v5 = vld [vmem:[#allocation8 + $0x610] sm:$0xff]  ;;  %v2727_v8 = vpack.c.bf16 %v1452_v52, %v1448_v51  ;;  %v1837_v52 = vld [vmem:[#allocation11 + $0x98] sm:$0xff] }
 0x254   :  { %2694 = vmatprep.subr.bf16.mxu0 %v2693_v11  ;;  %2822 = vmatprep.subr.bf16.mxu1 %v2821_v12  ;;  %v1422_v7 = vld [vmem:[#allocation8 + $0x630] sm:$0xff]  ;;  %v1427_v11 = vld [vmem:[#allocation8 + $0x658] sm:$0xff] }
 0x255   :  { %v1431_v12 = vld [vmem:[#allocation8 + $0x678] sm:$0xff]  ;;  %v2839_v14 = vpack.c.bf16 %v1422_v7, %v1418_v5  ;;  %v591_v7 = vrot.slane %v3373_v57, %v590_v48 }
 0x256   :  { %v2841_v18 = vpack.c.bf16 %v1431_v12, %v1427_v11  ;;  %v1463_v5 = vld [vmem:[#allocation8 + $0x778] sm:$0xff]  ;;  %v1456_v11 = vld [vmem:[#allocation8 + $0x740] sm:$0xff] }
 0x257   :  { %2696 = vmatpush1.bf16.msra.mxu0 %v2695_v19  ;;  %2824 = vmatpush1.bf16.msra.mxu1 %v2823_v20  ;;  %v1426_v19 = vld [vmem:[#allocation8 + $0x650] sm:$0xff]  ;;  %v1460_v12 = vld [vmem:[#allocation8 + $0x760] sm:$0xff]  ;;  %v2937_v21 = vadd.f32 %v3382_v63, %v591_v7  ;;  %v2939_v63 = vadd.f32 %v3389_v6, %v591_v7 }
 0x258   :  { %2698 = vmatprep.subr.bf16.mxu0 %v2697_v22  ;;  %2826 = vmatprep.subr.bf16.mxu1 %v2825_v23  ;;  %v1430_v20 = vld [vmem:[#allocation8 + $0x670] sm:$0xff]  ;;  %v1435_v22 = vld [vmem:[#allocation8 + $0x698] sm:$0xff]  ;;  %v2731_v57 = vpack.c.bf16 %v1460_v12, %v1456_v11  ;;  %v1838_v11 = vld [vmem:[#allocation11 + $0xa0] sm:$0xff] }
 0x259   :  { %v1439_v23 = vld [vmem:[#allocation8 + $0x6b8] sm:$0xff]  ;;  %v2843_v25 = vpack.c.bf16 %v1430_v20, %v1426_v19  ;;  %3006 = vtanh.f32 %v2937_v21 }
 0x25a   :  { %v2845_v29 = vpack.c.bf16 %v1439_v23, %v1435_v22  ;;  %v1467_v19 = vld [vmem:[#allocation8 + $0x798] sm:$0xff]  ;;  %v1464_v22 = vld [vmem:[#allocation8 + $0x780] sm:$0xff] }
 0x25b   :  { %2700 = vmatpush1.bf16.msra.mxu0 %v2699_v30  ;;  %2828 = vmatpush1.bf16.msra.mxu1 %v2827_v31  ;;  %v1434_v30 = vld [vmem:[#allocation8 + $0x690] sm:$0xff]  ;;  %v1471_v20 = vld [vmem:[#allocation8 + $0x7b8] sm:$0xff]  ;;  %v1468_v23 = vld [vmem:[#allocation8 + $0x7a0] sm:$0xff] }
 0x25c   :  { %2702 = vmatprep.subr.bf16.mxu0 %v2701_v34  ;;  %2830 = vmatprep.subr.bf16.mxu1 %v2829_v35  ;;  %v1438_v31 = vld [vmem:[#allocation8 + $0x6b0] sm:$0xff]  ;;  %v1443_v34 = vld [vmem:[#allocation8 + $0x6d8] sm:$0xff]  ;;  %v2861_v26 = vpack.c.bf16 %v1471_v20, %v1467_v19  ;;  %v2735_v33 = vpack.c.bf16 %v1468_v23, %v1464_v22 }
 0x25d   :  { %v1447_v35 = vld [vmem:[#allocation8 + $0x6f8] sm:$0xff]  ;;  %v2847_v37 = vpack.c.bf16 %v1438_v31, %v1434_v30  ;;  %v1477_v30 = vld [vmem:[#allocation8 + $0x7e8] sm:$0xff] }
 0x25e   :  { %v2849_v41 = vpack.c.bf16 %v1447_v35, %v1443_v34  ;;  %v1475_v31 = vld [vmem:[#allocation8 + $0x7d8] sm:$0xff]  ;;  %v1472_v35 = vld [vmem:[#allocation8 + $0x7c0] sm:$0xff]  ;;  %v1823_v19 = vld [vmem:[#allocation11 + $0x28] sm:$0xff] }
 0x25f   :  { %2704 = vmatpush1.bf16.msra.mxu0 %v2703_v42  ;;  %2832 = vmatpush1.bf16.msra.mxu1 %v2831_v43  ;;  %v1442_v42 = vld [vmem:[#allocation8 + $0x6d0] sm:$0xff] }
 0x260   :  { %2706 = vmatprep.subr.bf16.mxu0 %v2705_v46  ;;  %2834 = vmatprep.subr.bf16.mxu1 %v2833_v47  ;;  %v1446_v43 = vld [vmem:[#allocation8 + $0x6f0] sm:$0xff]  ;;  %v1451_v46 = vld [vmem:[#allocation8 + $0x718] sm:$0xff] }
 0x261   :  { %v1455_v47 = vld [vmem:[#allocation8 + $0x738] sm:$0xff]  ;;  %v2851_v50 = vpack.c.bf16 %v1446_v43, %v1442_v42  ;;  %v1867_v42 = vld [vmem:[#allocation11 + $0x188] sm:$0xff] }
 0x262   :  { %v1836_v51 = vld [vmem:[#allocation11 + $0x90] sm:$0xff]  ;;  %v1855_v22 = vld [vmem:[#allocation11 + $0x128] sm:$0xff] }
 0x263   :  { %2708 = vmatpush1.bf16.msra.mxu0 %v2707_v59  ;;  %2836 = vmatpush1.bf16.msra.mxu1 %v2835_v61  ;;  %v2853_v59 = vpack.c.bf16 %v1455_v47, %v1451_v46  ;;  %v1450_v61 = vld [vmem:[#allocation8 + $0x710] sm:$0xff]  ;;  %v1818_v46 = vld [vmem:[#allocation11] sm:$0xff] }
 0x264   :  { %2710 = vmatprep.subr.bf16.mxu0 %v2709_v2  ;;  %2838 = vmatprep.subr.bf16.mxu1 %v2837_v3  ;;  %v1461_v2 = vld [vmem:[#allocation8 + $0x768] sm:$0xff]  ;;  %v1459_v3 = vld [vmem:[#allocation8 + $0x758] sm:$0xff]  ;;  %v2855_v9 = vpack.c.bf16 %v1454_v0, %v1450_v61 }
 0x265   :  { %v1819_v47 = vld [vmem:[#allocation11 + $0x8] sm:$0xff]  ;;  %v1840_v23 = vld [vmem:[#allocation11 + $0xb0] sm:$0xff] }
 0x266   :  { %v2871_v61 = vpack.c.bf16 %v1819_v47, %v1818_v46  ;;  %v1845_v46 = vld [vmem:[#allocation11 + $0xd8] sm:$0xff]  ;;  %v1876_v47 = vld [vmem:[#allocation11 + $0x1d0] sm:$0xff] }
 0x267   :  { %2712 = vmatpush1.bf16.msra.mxu0 %v2711_v13  ;;  %2840 = vmatpush1.bf16.msra.mxu1 %v2839_v14  ;;  %v2729_v13 = vpack.c.bf16 %v1461_v2, %v1457_v1  ;;  %v2857_v14 = vpack.c.bf16 %v1463_v5, %v1459_v3  ;;  %v1820_v1 = vld [vmem:[#allocation11 + $0x10] sm:$0xff]  ;;  %v1821_v2 = vld [vmem:[#allocation11 + $0x18] sm:$0xff]  ;;  %v3007_v3 = vpop.eup %3006  ;;  %v2873_v5 = vpack.c.bf16 %v1837_v52, %v1836_v51 }
 0x268   :  { %2714 = vmatprep.subr.bf16.mxu0 %v2713_v17  ;;  %2842 = vmatprep.subr.bf16.mxu1 %v2841_v18  ;;  %v1465_v17 = vld [vmem:[#allocation8 + $0x788] sm:$0xff]  ;;  %v2875_v16 = vpack.c.bf16 %v1821_v2, %v1820_v1  ;;  %v1828_v51 = vld [vmem:[#allocation11 + $0x50] sm:$0xff]  ;;  %v1829_v52 = vld [vmem:[#allocation11 + $0x58] sm:$0xff] }
 0x269   :  { %v1469_v18 = vld [vmem:[#allocation8 + $0x7a8] sm:$0xff] }
 0x26a   :  { %v1846_v2 = vld [vmem:[#allocation11 + $0xe0] sm:$0xff] }
 0x26b   :  { %2716 = vmatpush1.bf16.msra.mxu0 %v2715_v24  ;;  %2844 = vmatpush1.bf16.msra.mxu1 %v2843_v25  ;;  %v2940_v24 = vadd.f32 %v3391_v10, %v3387_v4  ;;  %v2733_v25 = vpack.c.bf16 %v1469_v18, %v1465_v17  ;;  %v2865_v10 = vpack.c.bf16 %v1479_v32, %v1475_v31  ;;  %v1822_v18 = vld [vmem:[#allocation11 + $0x20] sm:$0xff]  ;;  %v1825_v32 = vld [vmem:[#allocation11 + $0x38] sm:$0xff] }
 0x26c   :  { %2718 = vmatprep.subr.bf16.mxu0 %v2717_v28  ;;  %2846 = vmatprep.subr.bf16.mxu1 %v2845_v29  ;;  %v1470_v28 = vld [vmem:[#allocation8 + $0x7b0] sm:$0xff]  ;;  %v1473_v29 = vld [vmem:[#allocation8 + $0x7c8] sm:$0xff] }
 0x26d   :  { %v2863_v34 = vpack.c.bf16 %v1470_v28, %v1466_v27  ;;  %3008 = vtanh.f32 %v2940_v24  ;;  %v2737_v4 = vpack.c.bf16 %v1477_v30, %v1473_v29  ;;  %v1841_v24 = vld [vmem:[#allocation11 + $0xb8] sm:$0xff]  ;;  %v2879_v27 = vpack.c.bf16 %v1823_v19, %v1822_v18  ;;  %v1824_v29 = vld [vmem:[#allocation11 + $0x30] sm:$0xff] }
 0x26e   :  { %3010 = vtanh.f32 %v2939_v63  ;;  %v2881_v30 = vpack.c.bf16 %v1841_v24, %v1840_v23  ;;  %v1856_v63 = vld [vmem:[#allocation11 + $0x130] sm:$0xff]  ;;  %v1849_v18 = vld [vmem:[#allocation11 + $0xf8] sm:$0xff] }
 0x26f   :  { %2720 = vmatpush1.bf16.msra.mxu0 %v2719_v36  ;;  %2848 = vmatpush1.bf16.msra.mxu1 %v2847_v37  ;;  %v1476_v36 = vld [vmem:[#allocation8 + $0x7e0] sm:$0xff]  ;;  %v1474_v37 = vld [vmem:[#allocation8 + $0x7d0] sm:$0xff] }
 0x270   :  { %2722 = vmatprep.subr.bf16.mxu0 %v2721_v40  ;;  %2850 = vmatprep.subr.bf16.mxu1 %v2849_v41  ;;  %v1835_v40 = vld [vmem:[#allocation11 + $0x88] sm:$0xff]  ;;  %v1866_v41 = vld [vmem:[#allocation11 + $0x180] sm:$0xff]  ;;  %v2739_v6 = vpack.c.bf16 %v1476_v36, %v1472_v35  ;;  %v2867_v43 = vpack.c.bf16 %v1478_v38, %v1474_v37  ;;  %v1880_v19 = vld [vmem:[#allocation11 + $0x1f0] sm:$0xff] }
 0x271   :  { %v2869_v44 = vpack.c.bf16 %v1835_v40, %v1834_v39  ;;  %v2901_v45 = vpack.c.bf16 %v1867_v42, %v1866_v41  ;;  %v1842_v36 = vld [vmem:[#allocation11 + $0xc0] sm:$0xff]  ;;  %v1875_v38 = vld [vmem:[#allocation11 + $0x1c8] sm:$0xff]  ;;  %v1864_v24 = vld [vmem:[#allocation11 + $0x170] sm:$0xff] }
 0x272   :  { %v1826_v40 = vld [vmem:[#allocation11 + $0x40] sm:$0xff]  ;;  %v1827_v41 = vld [vmem:[#allocation11 + $0x48] sm:$0xff] }
 0x273   :  { %2724 = vmatpush1.bf16.msra.mxu0 %v2723_v49  ;;  %2852 = vmatpush1.bf16.msra.mxu1 %v2851_v50  ;;  %v1850_v49 = vld [vmem:[#allocation11 + $0x100] sm:$0xff]  ;;  %v1851_v50 = vld [vmem:[#allocation11 + $0x108] sm:$0xff] }
 0x274   :  { %2726 = vmatprep.subr.bf16.mxu0 %v2725_v58  ;;  %2854 = vmatprep.subr.bf16.mxu1 %v2853_v59  ;;  %v1868_v58 = vld [vmem:[#allocation11 + $0x190] sm:$0xff]  ;;  %v1869_v59 = vld [vmem:[#allocation11 + $0x198] sm:$0xff]  ;;  %v2903_v0 = vpack.c.bf16 %v1851_v50, %v1850_v49  ;;  %v1858_v42 = vld [vmem:[#allocation11 + $0x140] sm:$0xff] }
 0x275   :  { %v2905_v7 = vpack.c.bf16 %v1869_v59, %v1868_v58  ;;  %v1877_v50 = vld [vmem:[#allocation11 + $0x1d8] sm:$0xff]  ;;  %v2891_v59 = vpack.c.bf16 %v1829_v52, %v1828_v51  ;;  %v2040_v52 = vand.u32 127, %v580_v53 }
 0x276   :  { %v2921_v58 = vpack.c.bf16 %v1877_v50, %v1876_v47  ;;  %v2088_v50 = vld [vmem:[#allocation13] ss:$0 sm:$0xff] }
 0x277   :  { %2728 = vmatpush1.bf16.msra.mxu0 %v2727_v8  ;;  %2856 = vmatpush1.bf16.msra.mxu1 %v2855_v9  ;;  %v1852_v8 = vld [vmem:[#allocation11 + $0x110] sm:$0xff]  ;;  %v1853_v9 = vld [vmem:[#allocation11 + $0x118] sm:$0xff]  ;;  %v3009_v12 = vpop.eup %3008  ;;  %vm2041_vm0 = vcmp.lt.s32.totalorder %v2040_v52, 10 }
 0x278   :  { %2730 = vmatprep.subr.bf16.mxu0 %v2729_v13  ;;  %2858 = vmatprep.subr.bf16.mxu1 %v2857_v14  ;;  %v1839_v13 = vld [vmem:[#allocation11 + $0xa8] sm:$0xff]  ;;  %v1870_v14 = vld [vmem:[#allocation11 + $0x1a0] sm:$0xff]  ;;  %v2907_v17 = vpack.c.bf16 %v1853_v9, %v1852_v8  ;;  %v3011_v20 = vpop.eup %3010 }
 0x279   :  { %v2877_v21 = vpack.c.bf16 %v1839_v13, %v1838_v11  ;;  %v1879_v8 = vld [vmem:[#allocation11 + $0x1e8] sm:$0xff]  ;;  %v1830_v9 = vld [vmem:[#allocation11 + $0x60] sm:$0xff] }
 0x27a   :  { %v1831_v11 = vld [vmem:[#allocation11 + $0x68] sm:$0xff] }
 0x27b   :  { %2732 = vmatpush1.bf16.msra.mxu0 %v2731_v57  ;;  %2860 = vmatpush1.bf16.msra.mxu1 %v2859_v60  ;;  %v2909_v57 = vpack.c.bf16 %v1871_v15, %v1870_v14  ;;  %v1854_v60 = vld [vmem:[#allocation11 + $0x120] sm:$0xff]  ;;  %v2895_v13 = vpack.c.bf16 %v1831_v11, %v1830_v9  ;;  %v1863_v15 = vld [vmem:[#allocation11 + $0x168] sm:$0xff] }
 0x27c   :  { %2734 = vmatprep.subr.bf16.mxu0 %v2733_v25  ;;  %2862 = vmatprep.subr.bf16.mxu1 %v2861_v26  ;;  %v1872_v25 = vld [vmem:[#allocation11 + $0x1b0] sm:$0xff]  ;;  %v1873_v26 = vld [vmem:[#allocation11 + $0x1b8] sm:$0xff]  ;;  %v2911_v28 = vpack.c.bf16 %v1855_v22, %v1854_v60  ;;  %v1862_v14 = vld [vmem:[#allocation11 + $0x160] sm:$0xff] }
 0x27d   :  { %v2913_v31 = vpack.c.bf16 %v1873_v26, %v1872_v25  ;;  %v1833_v60 = vld [vmem:[#allocation11 + $0x78] sm:$0xff] }
 0x27e   :  { %v1865_v25 = vld [vmem:[#allocation11 + $0x178] sm:$0xff] }
 0x27f   :  { %2736 = vmatpush1.bf16.msra.mxu0 %v2735_v33  ;;  %2864 = vmatpush1.bf16.msra.mxu1 %v2863_v34  ;;  %v1857_v33 = vld [vmem:[#allocation11 + $0x138] sm:$0xff]  ;;  %v2883_v34 = vpack.c.bf16 %v1825_v32, %v1824_v29  ;;  %v2931_v26 = vpack.c.bf16 %v1865_v25, %v1864_v24 }
 0x280   :  { %2738 = vmatprep.subr.bf16.mxu0 %v2737_v4  ;;  %2866 = vmatprep.subr.bf16.mxu1 %v2865_v10  ;;  %v2915_v35 = vpack.c.bf16 %v1857_v33, %v1856_v63  ;;  %v1843_v4 = vld [vmem:[#allocation11 + $0xc8] sm:$0xff]  ;;  %v1874_v10 = vld [vmem:[#allocation11 + $0x1c0] sm:$0xff] }
 0x281   :  { %v2885_v37 = vpack.c.bf16 %v1843_v4, %v1842_v36  ;;  %v2917_v39 = vpack.c.bf16 %v1875_v38, %v1874_v10 }
 0x283   :  { %2740 = vmatpush1.bf16.msra.mxu0 %v2739_v6  ;;  %2868 = vmatpush1.bf16.msra.mxu1 %v2867_v43  ;;  %v2887_v6 = vpack.c.bf16 %v1827_v41, %v1826_v40  ;;  %v1859_v43 = vld [vmem:[#allocation11 + $0x148] sm:$0xff] }
 0x284   :  { %2870 = vmatprep.subr.bf16.mxu0 %v2869_v44  ;;  %2902 = vmatprep.subr.bf16.mxu1 %v2901_v45  ;;  %v2919_v44 = vpack.c.bf16 %v1859_v43, %v1858_v42  ;;  %v1844_v45 = vld [vmem:[#allocation11 + $0xd0] sm:$0xff] }
 0x285   :  { %v2889_v49 = vpack.c.bf16 %v1845_v46, %v1844_v45 }
 0x286   :  { %1644 = vmatmul.mubr.f32.vlgmr.msra.gmra.mrb[4].mxu0 %v3007_v3  ;;  %1798 = vmatmul.mubr.f32.vlgmr.msra.gmra.mrb[4].mxu1 %v3007_v3  ;;  %v1847_v3 = vld [vmem:[#allocation11 + $0xe8] sm:$0xff] }
 0x287   :  { %1649 = vmatprep.mubr.f32.mxu0 %v3009_v12  ;;  %1803 = vmatprep.mubr.f32.mxu1 %v3009_v12 }
 0x288   :  { %2872 = vmatpush3.bf16.msra.mxu0 %v2871_v61  ;;  %2904 = vmatpush3.bf16.msra.mxu1 %v2903_v0  ;;  %v1860_v61 = vld [vmem:[#allocation11 + $0x150] sm:$0xff]  ;;  %v1861_v0 = vld [vmem:[#allocation11 + $0x158] sm:$0xff] }
 0x289   :  { %2874 = vmatprep.subr.bf16.mxu0 %v2873_v5  ;;  %2906 = vmatprep.subr.bf16.mxu1 %v2905_v7  ;;  %v2923_v1 = vpack.c.bf16 %v1861_v0, %v1860_v61  ;;  %v1878_v5 = vld [vmem:[#allocation11 + $0x1e0] sm:$0xff]  ;;  %v2893_v7 = vpack.c.bf16 %v1847_v3, %v1846_v2 }
 0x28a   :  { %1650 = vmatmul.mubr.f32.gmra.mrb[6].mxu0 %v3011_v20  ;;  %1804 = vmatmul.mubr.f32.gmra.mrb[6].mxu1 %v3011_v20  ;;  %v2925_v12 = vpack.c.bf16 %v1879_v8, %v1878_v5 }
 0x28c   :  { %2876 = vmatpush3.bf16.msra.mxu0 %v2875_v16  ;;  %2908 = vmatpush3.bf16.msra.mxu1 %v2907_v17  ;;  %v2927_v16 = vpack.c.bf16 %v1863_v15, %v1862_v14  ;;  %v1848_v17 = vld [vmem:[#allocation11 + $0xf0] sm:$0xff] }
 0x28d   :  { %2878 = vmatprep.subr.bf16.mxu0 %v2877_v21  ;;  %2910 = vmatprep.subr.bf16.mxu1 %v2909_v57  ;;  %v2897_v20 = vpack.c.bf16 %v1849_v18, %v1848_v17  ;;  %v1881_v21 = vld [vmem:[#allocation11 + $0x1f8] sm:$0xff]  ;;  %v1832_v57 = vld [vmem:[#allocation11 + $0x70] sm:$0xff] }
 0x28e   :  { %v2929_v22 = vpack.c.bf16 %v1881_v21, %v1880_v19  ;;  %v2899_v23 = vpack.c.bf16 %v1833_v60, %v1832_v57 }
 0x290   :  { %2880 = vmatpush3.bf16.msra.mxu0 %v2879_v27  ;;  %2912 = vmatpush3.bf16.msra.mxu1 %v2911_v28  ;;  %v1480_v27 = vld [vmem:[#allocation10] sm:$0xf] }
 0x291   :  { %2882 = vmatprep.subr.bf16.mxu0 %v2881_v30  ;;  %2914 = vmatprep.subr.bf16.mxu1 %v2913_v31  ;;  %v1485_v28 = vrot.slane %v1480_v27, %v582_v55  ;;  %v1489_v29 = vrot.slane %v1480_v27, %v586_v56  ;;  %v1497_v30 = vrot.slane %v1480_v27, %v594_v62 }
 0x292   :  { %v1493_v31 = vrot.slane %v1480_v27, %v590_v48 }
 0x294   :  { %2884 = vmatpush3.bf16.msra.mxu0 %v2883_v34  ;;  %2916 = vmatpush3.bf16.msra.mxu1 %v2915_v35 }
 0x295   :  { %2886 = vmatprep.subr.bf16.mxu0 %v2885_v37  ;;  %2918 = vmatprep.subr.bf16.mxu1 %v2917_v39 }
 0x298   :  { %2888 = vmatpush3.bf16.msra.mxu0 %v2887_v6  ;;  %2920 = vmatpush3.bf16.msra.mxu1 %v2919_v44 }
 0x299   :  { %2890 = vmatprep.subr.bf16.mxu0 %v2889_v49  ;;  %2922 = vmatprep.subr.bf16.mxu1 %v2921_v58 }
 0x29c   :  { %2892 = vmatpush3.bf16.msra.mxu0 %v2891_v59  ;;  %2924 = vmatpush3.bf16.msra.mxu1 %v2923_v1 }
 0x29d   :  { %2894 = vmatprep.subr.bf16.mxu0 %v2893_v7  ;;  %2926 = vmatprep.subr.bf16.mxu1 %v2925_v12 }
 0x2a0   :  { %2896 = vmatpush3.bf16.msra.mxu0 %v2895_v13  ;;  %2928 = vmatpush3.bf16.msra.mxu1 %v2927_v16 }
 0x2a1   :  { %2898 = vmatprep.subr.bf16.mxu0 %v2897_v20  ;;  %2930 = vmatprep.subr.bf16.mxu1 %v2929_v22 }
 0x2a4   :  { %2900 = vmatpush3.bf16.msra.mxu0 %v2899_v23  ;;  %2932 = vmatpush3.bf16.msra.mxu1 %v2931_v26 }
 0x359   :  { %v1645_v32 = vpop.f32.mrb[4].mxu0  ;;  %v1799_v63 = vpop.f32.mrb[4].mxu1 }
 0x35a   :  { %v2941_v33 = vadd.f32 %v1645_v32, %v1485_v28  ;;  %v1647_v34 = vpop.f32.mrb[5].mxu0  ;;  %v1801_v35 = vpop.f32.mrb[5].mxu1  ;;  %v2945_v10 = vadd.f32 %v1799_v63, %v1493_v31 }
 0x35b   :  { %v2942_v36 = vadd.f32 %v1647_v34, %v1489_v29  ;;  %v2946_v4 = vadd.f32 %v1801_v35, %v1497_v30 }
 0x35c   :  { %3012 = vtanh.f32 %v2941_v33 }
 0x35d   :  { %v1651_v37 = vpop.f32.mrb[6].mxu0  ;;  %v1805_v55 = vpop.f32.mrb[6].mxu1  ;;  %3014 = vtanh.f32 %v2942_v36 }
 0x35e   :  { %v2943_v38 = vadd.f32 %v1651_v37, %v1485_v28  ;;  %v1653_v56 = vpop.f32.mrb[7].mxu0  ;;  %v1807_v39 = vpop.f32.mrb[7].mxu1  ;;  %3016 = vtanh.f32 %v2946_v4  ;;  %v2947_v54 = vadd.f32 %v1805_v55, %v1493_v31 }
 0x35f   :  { %v2944_v62 = vadd.f32 %v1653_v56, %v1489_v29  ;;  %v2948_v40 = vadd.f32 %v1807_v39, %v1497_v30  ;;  %3018 = vtanh.f32 %v2945_v10 }
 0x360   :  { %3020 = vtanh.f32 %v2943_v38 }
 0x361   :  { %3022 = vtanh.f32 %v2944_v62 }
 0x362   :  { %3024 = vtanh.f32 %v2948_v40 }
 0x363   :  { %3026 = vtanh.f32 %v2947_v54 }
 0x366   :  { %v3013_v48 = vpop.eup %3012 }
 0x367   :  { %v3015_v41 = vpop.eup %3014 }
 0x368   :  { %v3017_v42 = vpop.eup %3016  ;;  %1953 = vmatprep.mubr.f32.mxu0 %v3015_v41 }
 0x369   :  { %v3019_v6 = vpop.eup %3018  ;;  %2028 = vmatprep.mubr.f32.mxu1 %v3017_v42  ;;  %1954 = vmatmul.mubr.f32.vlgmr.msra.gmra.mrb[8].mxu0 %v3013_v48 }
 0x36a   :  { %v3021_v43 = vpop.eup %3020  ;;  %2029 = vmatmul.mubr.f32.vlgmr.msra.gmra.mrb[8].mxu1 %v3019_v6 }
 0x36b   :  { %v3023_v44 = vpop.eup %3022 }
 0x36c   :  { %v3025_v45 = vpop.eup %3024  ;;  %1958 = vmatprep.mubr.f32.mxu0 %v3023_v44 }
 0x36d   :  { %v3027_v46 = vpop.eup %3026  ;;  %2033 = vmatprep.mubr.f32.mxu1 %v3025_v45  ;;  %1959 = vmatmul.mubr.f32.gmra.mrb[10].mxu0 %v3021_v43 }
 0x36e   :  { %2034 = vmatmul.mubr.f32.gmra.mrb[10].mxu1 %v3027_v46 }
 0x43c   :  { %v2121_v47 = vpop.f32.mrb[8].mxu0 }
 0x43d   :  { %v2159_v49 = vpop.f32.mrb[8].mxu1  ;;  %v2122_v51 = vpop.f32.mrb[9].mxu0 }
 0x43e   :  { %v2123_v58 = vadd.f32 %v2122_v51, %v2121_v47  ;;  %v2160_v59 = vpop.f32.mrb[9].mxu1 }
 0x43f   :  { %v2161_v61 = vadd.f32 %v2160_v59, %v2159_v49 }
 0x440   :  { %v1956_v0 = vadd.f32 %v2123_v58, %v2088_v50  ;;  %v2124_v1 = vpop.f32.mrb[10].mxu0 }
 0x441   :  { %v2162_v2 = vpop.f32.mrb[10].mxu1  ;;  %v2125_v3 = vpop.f32.mrb[11].mxu0 }
 0x442   :  { %v2126_v5 = vadd.f32 %v2125_v3, %v2124_v1  ;;  %v2163_v7 = vpop.f32.mrb[11].mxu1  ;;  %v2031_v8 = vadd.f32 %v2161_v61, %v1956_v0 }
 0x443   :  { %v2164_v9 = vadd.f32 %v2163_v7, %v2162_v2 }
 0x444   :  { %v1961_v11 = vadd.f32 %v2126_v5, %v2088_v50  ;;  %v2042_v12 = vsel %vm2041_vm0, %v2031_v8, -1e+30 }
 0x445   :  { %2044 = vmax.xlane.f32.xlu0 %v2042_v12 }
 0x446   :  { %v2036_v13 = vadd.f32 %v2164_v9, %v1961_v11 }
 0x448   :  { %v2043_v14 = vsel %vm2041_vm0, %v2036_v13, -1e+30 }
 0x449   :  { %2046 = vmax.xlane.f32.xlu0 %v2043_v14 }
 0x4d2   :  { %v2045_v53 = vpop.xlane.xlu0 %2044 }
 0x4d3   :  { %v2048_v15 = vsub.f32 %v2042_v12, %v2045_v53 }
 0x4d5   :  { %v2050_v16 = vmul.f32 1.442695, %v2048_v15 }
 0x4d6   :  { %v2047_v17 = vpop.xlane.xlu0 %2046 }
 0x4d7   :  { %3028 = vpow2.f32 %v2050_v16  ;;  %v2049_v18 = vsub.f32 %v2043_v14, %v2047_v17 }
 0x4d9   :  { %v2052_v19 = vmul.f32 1.442695, %v2049_v18 }
 0x4db   :  { %3030 = vpow2.f32 %v2052_v19 }
 0x4e1   :  { %v3029_v20 = vpop.eup %3028 }
 0x4e2   :  { %v2054_v21 = vsel %vm2041_vm0, %v3029_v20, 0.0 }
 0x4e3   :  { %2056 = vadd.xlane.f32.xlu1 %v2054_v21 }
 0x4e5   :  { %v3031_v57 = vpop.eup %3030 }
 0x4e6   :  { %v2055_v60 = vsel %vm2041_vm0, %v3031_v57, 0.0 }
 0x4e7   :  { %2058 = vadd.xlane.f32.xlu1 %v2055_v60 }
 0x570   :  { %v2057_v22 = vpop.xlane.xlu1 %2056 }
 0x571   :  { %3032 = vlog2.f32 %v2057_v22 }
 0x574   :  { %v2059_v23 = vpop.xlane.xlu1 %2058 }
 0x575   :  { %3034 = vlog2.f32 %v2059_v23 }
 0x57b   :  { %v3033_v24 = vpop.eup %3032 }
 0x57c   :  { %v2061_v25 = vmul.f32 0.6931472, %v3033_v24 }
 0x57e   :  { %v2064_v26 = vsub.f32 %v2048_v15, %v2061_v25 }
 0x57f   :  { %v3035_v27 = vpop.eup %3034 }
 0x580   :  { %2066 = vst [vmem:[#allocation14] sm:$0xff] %v2064_v26  ;;  %v2063_v28 = vmul.f32 0.6931472, %v3035_v27 }
 0x582   :  { %v2065_v29 = vsub.f32 %v2049_v18, %v2063_v28 }
 0x584   :  { %2067 = vst [vmem:[#allocation14 + $0x8] sm:$0xff] %v2065_v29 }
 0x585   :  { %3201 = shalt.err (!%p3198_p4)
}
 0x586   :  { %s3202_s20 = scalar_lea.hbm %s3437_s7, 256 }
 0x587   :  { %p3203_p5 = scmp.ne.s32.totalorder %s3437_s7, %s3202_s20  ;;  %p3206_p6 = scmp.lt.u32.totalorder %s3202_s20, %s3437_s7 }
 0x589   :  { %p3208_p7 = pnand %p3206_p6, %p3203_p5 }
 0x58b   :  { %3211 = shalt.err (!%p3208_p7)
}
 0x58c   :  { %2079 = dma.vmem_to_hbm [thread:$0]  %s2074_s16, 256, %s3437_s7, [#allocation4], %s3227_s3, %s3227_s3, %s3228_s11  }
 0x58d   :  { %3220 = dma.done.wait [#allocation4], 256  }
 0x58e   :  { %3221 = vsyncadd [#allocation4], 4294967040 }
 0x58f   :  { %2083 = vsyncpa [#allocation3], 1 }
 0x590   :  { %2084 = vsyncpa [#allocation6], 1 }
 0x591   :  { %2085 = vsyncpa [#allocation9], 1 }
 0x592   :  { %2086 = vsyncpa [#allocation12], 1 }
 0x593   :  { %2087 = vsyncpa [#allocation4], 1 }

</bundles_post_ra>
